<compile_context>
chip_gen: v7x
topology: tpu7x:2x2x1
jax: 0.10.0
libtpu: 0.0.40
codegen_flags: <defaults>
</compile_context>

<pallas_src>
import jax
import jax.numpy as jnp
from jax.experimental import pallas as pl
from jax.experimental.pallas import tpu as pltpu


def _round_up(x: int, m: int) -> int:
    return (x + m - 1) // m * m


def _make_kernel(field_pos, v_pad: int, d1: int, ch: int):
    """Kernel specialized on the static field structure.

    field_pos: tuple of tuples; field_pos[f] lists the packed position indices
               (rows of idx/w) belonging to field f.
    """

    def kernel(idx_ref, w_ref, ctns_ref, ptab_ref, w2c_ref, b2_ref, w3_ref,
               b3_ref, out_ref):
        tb = idx_ref.shape[1]
        n_chunks = tb // ch
        b3 = b3_ref[0, 0]                     # scalar from SMEM
        # Sublane iota over the vocab axis, shared by every chunk/position.
        viota = jax.lax.broadcasted_iota(jnp.int32, (v_pad, ch), 0)

        for c in range(n_chunks):             # static lane sub-tiling
            lo = c * ch
            # Continuous-feature part of linear2: [D1, CH].
            h = jnp.dot(w2c_ref[...], ctns_ref[:, lo:lo + ch],
                        preferred_element_type=jnp.float32)

            for f, positions in enumerate(field_pos):
                # Scatter this field's hot weights into a [V_pad, CH] slab.
                p0 = positions[0]
                acc = jnp.where(viota == idx_ref[p0:p0 + 1, lo:lo + ch],
                                w_ref[p0:p0 + 1, lo:lo + ch], 0.0)
                for p in positions[1:]:
                    # NOTE: duplicate indices inside a multihot field land in
                    # the same lane and their weights ADD — this matches the
                    # reference's sum-over-hots semantics; do not "fix" it
                    # into a select.
                    acc = acc + jnp.where(viota == idx_ref[p:p + 1, lo:lo + ch],
                                          w_ref[p:p + 1, lo:lo + ch], 0.0)
                # Folded (table @ w2_field) matmul: [D1, V_pad] @ [V_pad, CH].
                h = h + jnp.dot(ptab_ref[f * d1:(f + 1) * d1, :], acc,
                                preferred_element_type=jnp.float32)

            h = jnp.maximum(h + b2_ref[...], 0.0)          # [D1, CH], lane-dense

            # TODO(synk): F.dropout is stochastic; config dropout probs are 0.0
            # here, for which dropout is exactly the identity, so it is omitted.

            # linear3 + numerically stable sigmoid, [1, CH] (batch on lanes).
            z = jnp.dot(w3_ref[...], h, preferred_element_type=jnp.float32) + b3
            pos = z >= 0.0
            ez = jnp.exp(jnp.where(pos, -z, z))            # exp of non-positive
            r = 1.0 / (1.0 + ez)
            out_ref[:, lo:lo + ch] = jnp.where(pos, r, ez * r)

    return kernel


def base_learner_forward(params, onehot_i, onehot_x, multihot_list, ctns,
                         config, *, batch_tile=1024, lane_chunk=256):
    """Pallas-backed equivalent of BaseLearner.forward (eval-deterministic)."""
    table, w2, b2, w3, b3 = params
    V, E = table.shape
    B, C = ctns.shape
    F1 = 0 if 0 in onehot_i.shape else onehot_i.shape[1]
    nM = len(multihot_list)
    F = F1 + nM
    D0, D1, D2 = config['dim']
    assert D2 == 1 and D0 == F * E + C and F >= 1

    # --- parameter folding (data independent): table folded into linear2.
    w2f = w2.astype(jnp.float32)                        # [D1, D0]
    tab = table.astype(jnp.float32)                     # [V, E]
    V_pad = _round_up(V, 128)
    W2_emb = w2f[:, :F * E].reshape(D1, F, E)           # [D1, F, E]
    ptab = jnp.einsum('dfe,ve->fdv', W2_emb, tab)       # [F, D1, V]
    ptab = jnp.pad(ptab, ((0, 0), (0, 0), (0, V_pad - V)))
    ptab2 = ptab.reshape(F * D1, V_pad)                 # field-f rows at f*D1
    W2_ctns = w2f[:, F * E:]                            # [D1, C]

    # --- pack hot indices / weights (per-field LOCAL indices, no offsets).
    idx_parts, w_parts, field_pos = [], [], []
    pcount = 0
    if F1:
        for _ in range(F1):
            field_pos.append((pcount,))
            pcount += 1
        idx_parts.append(onehot_i.astype(jnp.int32))
        w_parts.append(onehot_x.astype(jnp.float32))
    for (mi, mx) in multihot_list:
        m = mi.shape[1]
        field_pos.append(tuple(range(pcount, pcount + m)))
        pcount += m
        idx_parts.append(mi.astype(jnp.int32))
        w_parts.append(mx.astype(jnp.float32))
    idx_all = jnp.concatenate(idx_parts, axis=1)        # [B, P]
    w_all = jnp.concatenate(w_parts, axis=1)            # [B, P]
    P = idx_all.shape[1]
    assert pcount == P

    # --- batch tiling.  Lane-dense tiles (multiples of 128); default 1024 rows
    # amortizes the ~0.35 us/step overhead, and capping TB at cdiv(B,2) keeps
    # nb>=2 so v7x's two TensorCores both get work on medium batches.
    TB = max(128, min(batch_tile, _round_up(pl.cdiv(B, 2), 128)))
    B_pad = _round_up(B, TB)
    nb = B_pad // TB
    CH = lane_chunk if TB % lane_chunk == 0 else 128
    assert TB % CH == 0

    # --- batch-on-lanes transposes + zero padding (pad rows contribute 0).
    idx_T = jnp.pad(idx_all.T, ((0, 0), (0, B_pad - B)))               # [P, Bp]
    w_T = jnp.pad(w_all.T, ((0, 0), (0, B_pad - B)))                   # [P, Bp]
    ctns_T = jnp.pad(ctns.astype(jnp.float32).T, ((0, 0), (0, B_pad - B)))  # [C, Bp]

    row = lambda i: (0, i)
    const = lambda i: (0, 0)
    out = pl.pallas_call(
        _make_kernel(tuple(field_pos), V_pad, D1, CH),
        out_shape=jax.ShapeDtypeStruct((1, B_pad), jnp.float32),
        grid=(nb,),
        in_specs=[
            pl.BlockSpec((P, TB), row),              # packed hot indices
            pl.BlockSpec((P, TB), row),              # packed hot weights
            pl.BlockSpec((C, TB), row),              # continuous features
            pl.BlockSpec((F * D1, V_pad), const),    # folded table (resident)
            pl.BlockSpec((D1, C), const),            # W2 rows for ctns (resident)
            pl.BlockSpec((D1, 1), const),            # b2 (column -> lane bcast)
            pl.BlockSpec((1, D1), const),            # w3
            pl.BlockSpec(memory_space=pltpu.MemorySpace.SMEM),   # b3 scalar
        ],
        out_specs=pl.BlockSpec((1, TB), lambda i: (0, i)),       # lane-dense out
        compiler_params=pltpu.CompilerParams(
            dimension_semantics=("parallel",),       # shard batch across v7x TCs
        ),
    )(idx_T, w_T, ctns_T, ptab2, W2_ctns,
      b2.reshape(D1, 1).astype(jnp.float32),
      w3.reshape(1, D1).astype(jnp.float32),
      b3.reshape(1, 1).astype(jnp.float32))
    return jnp.squeeze(out[:, :B])


def base_learner_reference(params, onehot_i, onehot_x, multihot_list, ctns):
    """Pure-JAX reference mirroring the PyTorch forward (dropout p=0)."""
    table, w2, b2, w3, b3 = params
    oh = table[onehot_i] * onehot_x[:, :, None]
    parts = [oh.reshape(oh.shape[0], -1)]
    for mi, mx in multihot_list:
        parts.append((table[mi] * mx[:, :, None]).sum(axis=1))
    parts.append(ctns)
    x = jnp.concatenate(parts, axis=1)
    h = jnp.maximum(x @ w2.T + b2, 0.0)
    o = jax.nn.sigmoid(h @ w3.T + b3)
    return jnp.squeeze(o)


if __name__ == "__main__":
    # Small, forward-consistent shapes.
    B = 8                # spt_size
    E = 8                # embedding_dim
    F1 = 3               # onehot_fieldnum
    nM = 2               # number of multihot fields
    M = 4                # maxhotnum
    C = 5                # continuous_fieldnum
    NUM_EMB = 50
    D0 = F1 * E + nM * E + C          # 45
    config = dict(num_embeddings=NUM_EMB, embedding_dim=E,
                  dim=[D0, 32, 1], dropout=[0.0, 0.0])

    key = jax.random.PRNGKey(0)
    keys = jax.random.split(key, 12)

    # Deterministic parameter init (shapes from BaseLearner.__init__).
    table = jax.random.normal(keys[0], (NUM_EMB, E), jnp.float32)
    w2 = jax.random.normal(keys[1], (config['dim'][1], config['dim'][0]), jnp.float32) * 0.1
    b2 = jax.random.normal(keys[2], (config['dim'][1],), jnp.float32) * 0.1
    w3 = jax.random.normal(keys[3], (config['dim'][2], config['dim'][1]), jnp.float32) * 0.1
    b3 = jax.random.normal(keys[4], (config['dim'][2],), jnp.float32) * 0.1
    params = (table, w2, b2, w3, b3)

    # Deterministic example inputs.
    onehot_i = jax.random.randint(keys[5], (B, F1), 0, NUM_EMB, dtype=jnp.int32)
    onehot_x = (jax.random.uniform(keys[6], (B, F1)) > 0.3).astype(jnp.float32)
    multihot_list = []
    for k in range(nM):
        mi = jax.random.randint(keys[7 + k], (B, M), 0, NUM_EMB, dtype=jnp.int32)
        mx = (jax.random.uniform(keys[9 + k], (B, M)) > 0.5).astype(jnp.float32)
        multihot_list.append((mi, mx))
    ctns = jax.random.normal(keys[11], (B, C), jnp.float32)

    out = base_learner_forward(params, onehot_i, onehot_x, multihot_list, ctns, config)
    out = jax.block_until_ready(out)

    ref = base_learner_reference(params, onehot_i, onehot_x, multihot_list, ctns)
    ref = jax.block_until_ready(ref)

    assert out.shape == (B,), f"unexpected output shape {out.shape}"
    assert jnp.allclose(out, ref, atol=1e-5, rtol=1e-5), (out, ref)
    print("KERNEL_OK")
</pallas_src>

<mosaic_0001>
module attributes {stable_mosaic.version = 11 : i64} {
  func.func @kernel(%arg0: i32, %arg1: memref<11x128xi32, #tpu.memory_space<vmem>>, %arg2: memref<11x128xf32, #tpu.memory_space<vmem>>, %arg3: memref<5x128xf32, #tpu.memory_space<vmem>>, %arg4: memref<160x128xf32, #tpu.memory_space<vmem>>, %arg5: memref<32x5xf32, #tpu.memory_space<vmem>>, %arg6: memref<32x1xf32, #tpu.memory_space<vmem>>, %arg7: memref<1x32xf32, #tpu.memory_space<vmem>>, %arg8: memref<1x1xf32, #tpu.memory_space<smem>>, %arg9: memref<1x128xf32, #tpu.memory_space<vmem>>) attributes {dimension_semantics = [#tpu.dimension_semantics<parallel>], iteration_bounds = array<i64: 1>, scalar_prefetch = 0 : i64, scratch_operands = 0 : i64, tpu.core_type = #tpu.core_type<tc>, window_params = [{transform_indices = @transform_0, window_bounds = array<i64: 11, 128>}, {transform_indices = @transform_1, window_bounds = array<i64: 11, 128>}, {transform_indices = @transform_2, window_bounds = array<i64: 5, 128>}, {pipeline_mode = #tpu.pipeline_mode<synchronous>, transform_indices = @transform_3, window_bounds = array<i64: 160, 128>}, {pipeline_mode = #tpu.pipeline_mode<synchronous>, transform_indices = @transform_4, window_bounds = array<i64: 32, 5>}, {pipeline_mode = #tpu.pipeline_mode<synchronous>, transform_indices = @transform_5, window_bounds = array<i64: 32, 1>}, {pipeline_mode = #tpu.pipeline_mode<synchronous>, transform_indices = @transform_6, window_bounds = array<i64: 1, 32>}, {transform_indices = @transform_7, window_bounds = array<i64: 1, 1>}, {transform_indices = @transform_8, window_bounds = array<i64: 1, 128>}]} {
    %c0 = arith.constant 0 : index
    %c0_0 = arith.constant 0 : index
    %0 = memref.load %arg8[%c0, %c0_0] : memref<1x1xf32, #tpu.memory_space<smem>>
    %1 = tpu.iota {dimensions = array<i32: 0>} : vector<128x128xi32>
    %c0_1 = arith.constant 0 : index
    %c0_2 = arith.constant 0 : index
    %2 = vector.load %arg5[%c0_1, %c0_2] : memref<32x5xf32, #tpu.memory_space<vmem>>, vector<32x5xf32>
    %c0_3 = arith.constant 0 : index
    %c0_4 = arith.constant 0 : index
    %3 = vector.load %arg3[%c0_3, %c0_4] : memref<5x128xf32, #tpu.memory_space<vmem>>, vector<5x128xf32>
    %cst = arith.constant dense<0.000000e+00> : vector<32x128xf32>
    %4 = tpu.matmul %2, %3, %cst {dimension_numbers = #tpu.dot_dimension_numbers<[1], [0], [0], [1], [0, 0, 1, 1], [], []>} : vector<32x5xf32>, vector<5x128xf32>, vector<32x128xf32> -> vector<32x128xf32>
    %c0_5 = arith.constant 0 : index
    %c0_6 = arith.constant 0 : index
    %5 = vector.load %arg1[%c0_5, %c0_6] : memref<11x128xi32, #tpu.memory_space<vmem>>, vector<1x128xi32>
    %6 = vector.broadcast %5 : vector<1x128xi32> to vector<128x128xi32>
    %7 = arith.cmpi eq, %1, %6 : vector<128x128xi32>
    %c0_7 = arith.constant 0 : index
    %c0_8 = arith.constant 0 : index
    %8 = vector.load %arg2[%c0_7, %c0_8] : memref<11x128xf32, #tpu.memory_space<vmem>>, vector<1x128xf32>
    %cst_9 = arith.constant 0.000000e+00 : f32
    %9 = vector.shape_cast %8 : vector<1x128xf32> to vector<1x128xf32>
    %10 = vector.broadcast %9 : vector<1x128xf32> to vector<128x128xf32>
    %11 = vector.broadcast %cst_9 : f32 to vector<128x128xf32>
    %12 = arith.select %7, %10, %11 : vector<128x128xi1>, vector<128x128xf32>
    %c0_10 = arith.constant 0 : index
    %c0_11 = arith.constant 0 : index
    %13 = vector.load %arg4[%c0_10, %c0_11] : memref<160x128xf32, #tpu.memory_space<vmem>>, vector<32x128xf32>
    %cst_12 = arith.constant dense<0.000000e+00> : vector<32x128xf32>
    %14 = tpu.matmul %13, %12, %cst_12 {dimension_numbers = #tpu.dot_dimension_numbers<[1], [0], [0], [1], [0, 0, 1, 1], [], []>} : vector<32x128xf32>, vector<128x128xf32>, vector<32x128xf32> -> vector<32x128xf32>
    %15 = arith.addf %4, %14 : vector<32x128xf32>
    %c1 = arith.constant 1 : index
    %c0_13 = arith.constant 0 : index
    %16 = vector.load %arg1[%c1, %c0_13] : memref<11x128xi32, #tpu.memory_space<vmem>>, vector<1x128xi32>
    %17 = vector.broadcast %16 : vector<1x128xi32> to vector<128x128xi32>
    %18 = arith.cmpi eq, %1, %17 : vector<128x128xi32>
    %c1_14 = arith.constant 1 : index
    %c0_15 = arith.constant 0 : index
    %19 = vector.load %arg2[%c1_14, %c0_15] : memref<11x128xf32, #tpu.memory_space<vmem>>, vector<1x128xf32>
    %cst_16 = arith.constant 0.000000e+00 : f32
    %20 = vector.shape_cast %19 : vector<1x128xf32> to vector<1x128xf32>
    %21 = vector.broadcast %20 : vector<1x128xf32> to vector<128x128xf32>
    %22 = vector.broadcast %cst_16 : f32 to vector<128x128xf32>
    %23 = arith.select %18, %21, %22 : vector<128x128xi1>, vector<128x128xf32>
    %c32 = arith.constant 32 : index
    %c0_17 = arith.constant 0 : index
    %24 = vector.load %arg4[%c32, %c0_17] : memref<160x128xf32, #tpu.memory_space<vmem>>, vector<32x128xf32>
    %cst_18 = arith.constant dense<0.000000e+00> : vector<32x128xf32>
    %25 = tpu.matmul %24, %23, %cst_18 {dimension_numbers = #tpu.dot_dimension_numbers<[1], [0], [0], [1], [0, 0, 1, 1], [], []>} : vector<32x128xf32>, vector<128x128xf32>, vector<32x128xf32> -> vector<32x128xf32>
    %26 = arith.addf %15, %25 : vector<32x128xf32>
    %c2 = arith.constant 2 : index
    %c0_19 = arith.constant 0 : index
    %27 = vector.load %arg1[%c2, %c0_19] : memref<11x128xi32, #tpu.memory_space<vmem>>, vector<1x128xi32>
    %28 = vector.broadcast %27 : vector<1x128xi32> to vector<128x128xi32>
    %29 = arith.cmpi eq, %1, %28 : vector<128x128xi32>
    %c2_20 = arith.constant 2 : index
    %c0_21 = arith.constant 0 : index
    %30 = vector.load %arg2[%c2_20, %c0_21] : memref<11x128xf32, #tpu.memory_space<vmem>>, vector<1x128xf32>
    %cst_22 = arith.constant 0.000000e+00 : f32
    %31 = vector.shape_cast %30 : vector<1x128xf32> to vector<1x128xf32>
    %32 = vector.broadcast %31 : vector<1x128xf32> to vector<128x128xf32>
    %33 = vector.broadcast %cst_22 : f32 to vector<128x128xf32>
    %34 = arith.select %29, %32, %33 : vector<128x128xi1>, vector<128x128xf32>
    %c64 = arith.constant 64 : index
    %c0_23 = arith.constant 0 : index
    %35 = vector.load %arg4[%c64, %c0_23] : memref<160x128xf32, #tpu.memory_space<vmem>>, vector<32x128xf32>
    %cst_24 = arith.constant dense<0.000000e+00> : vector<32x128xf32>
    %36 = tpu.matmul %35, %34, %cst_24 {dimension_numbers = #tpu.dot_dimension_numbers<[1], [0], [0], [1], [0, 0, 1, 1], [], []>} : vector<32x128xf32>, vector<128x128xf32>, vector<32x128xf32> -> vector<32x128xf32>
    %37 = arith.addf %26, %36 : vector<32x128xf32>
    %c3 = arith.constant 3 : index
    %c0_25 = arith.constant 0 : index
    %38 = vector.load %arg1[%c3, %c0_25] : memref<11x128xi32, #tpu.memory_space<vmem>>, vector<1x128xi32>
    %39 = vector.broadcast %38 : vector<1x128xi32> to vector<128x128xi32>
    %40 = arith.cmpi eq, %1, %39 : vector<128x128xi32>
    %c3_26 = arith.constant 3 : index
    %c0_27 = arith.constant 0 : index
    %41 = vector.load %arg2[%c3_26, %c0_27] : memref<11x128xf32, #tpu.memory_space<vmem>>, vector<1x128xf32>
    %cst_28 = arith.constant 0.000000e+00 : f32
    %42 = vector.shape_cast %41 : vector<1x128xf32> to vector<1x128xf32>
    %43 = vector.broadcast %42 : vector<1x128xf32> to vector<128x128xf32>
    %44 = vector.broadcast %cst_28 : f32 to vector<128x128xf32>
    %45 = arith.select %40, %43, %44 : vector<128x128xi1>, vector<128x128xf32>
    %c4 = arith.constant 4 : index
    %c0_29 = arith.constant 0 : index
    %46 = vector.load %arg1[%c4, %c0_29] : memref<11x128xi32, #tpu.memory_space<vmem>>, vector<1x128xi32>
    %47 = vector.broadcast %46 : vector<1x128xi32> to vector<128x128xi32>
    %48 = arith.cmpi eq, %1, %47 : vector<128x128xi32>
    %c4_30 = arith.constant 4 : index
    %c0_31 = arith.constant 0 : index
    %49 = vector.load %arg2[%c4_30, %c0_31] : memref<11x128xf32, #tpu.memory_space<vmem>>, vector<1x128xf32>
    %cst_32 = arith.constant 0.000000e+00 : f32
    %50 = vector.shape_cast %49 : vector<1x128xf32> to vector<1x128xf32>
    %51 = vector.broadcast %50 : vector<1x128xf32> to vector<128x128xf32>
    %52 = vector.broadcast %cst_32 : f32 to vector<128x128xf32>
    %53 = arith.select %48, %51, %52 : vector<128x128xi1>, vector<128x128xf32>
    %54 = arith.addf %45, %53 : vector<128x128xf32>
    %c5 = arith.constant 5 : index
    %c0_33 = arith.constant 0 : index
    %55 = vector.load %arg1[%c5, %c0_33] : memref<11x128xi32, #tpu.memory_space<vmem>>, vector<1x128xi32>
    %56 = vector.broadcast %55 : vector<1x128xi32> to vector<128x128xi32>
    %57 = arith.cmpi eq, %1, %56 : vector<128x128xi32>
    %c5_34 = arith.constant 5 : index
    %c0_35 = arith.constant 0 : index
    %58 = vector.load %arg2[%c5_34, %c0_35] : memref<11x128xf32, #tpu.memory_space<vmem>>, vector<1x128xf32>
    %cst_36 = arith.constant 0.000000e+00 : f32
    %59 = vector.shape_cast %58 : vector<1x128xf32> to vector<1x128xf32>
    %60 = vector.broadcast %59 : vector<1x128xf32> to vector<128x128xf32>
    %61 = vector.broadcast %cst_36 : f32 to vector<128x128xf32>
    %62 = arith.select %57, %60, %61 : vector<128x128xi1>, vector<128x128xf32>
    %63 = arith.addf %54, %62 : vector<128x128xf32>
    %c6 = arith.constant 6 : index
    %c0_37 = arith.constant 0 : index
    %64 = vector.load %arg1[%c6, %c0_37] : memref<11x128xi32, #tpu.memory_space<vmem>>, vector<1x128xi32>
    %65 = vector.broadcast %64 : vector<1x128xi32> to vector<128x128xi32>
    %66 = arith.cmpi eq, %1, %65 : vector<128x128xi32>
    %c6_38 = arith.constant 6 : index
    %c0_39 = arith.constant 0 : index
    %67 = vector.load %arg2[%c6_38, %c0_39] : memref<11x128xf32, #tpu.memory_space<vmem>>, vector<1x128xf32>
    %cst_40 = arith.constant 0.000000e+00 : f32
    %68 = vector.shape_cast %67 : vector<1x128xf32> to vector<1x128xf32>
    %69 = vector.broadcast %68 : vector<1x128xf32> to vector<128x128xf32>
    %70 = vector.broadcast %cst_40 : f32 to vector<128x128xf32>
    %71 = arith.select %66, %69, %70 : vector<128x128xi1>, vector<128x128xf32>
    %72 = arith.addf %63, %71 : vector<128x128xf32>
    %c96 = arith.constant 96 : index
    %c0_41 = arith.constant 0 : index
    %73 = vector.load %arg4[%c96, %c0_41] : memref<160x128xf32, #tpu.memory_space<vmem>>, vector<32x128xf32>
    %cst_42 = arith.constant dense<0.000000e+00> : vector<32x128xf32>
    %74 = tpu.matmul %73, %72, %cst_42 {dimension_numbers = #tpu.dot_dimension_numbers<[1], [0], [0], [1], [0, 0, 1, 1], [], []>} : vector<32x128xf32>, vector<128x128xf32>, vector<32x128xf32> -> vector<32x128xf32>
    %75 = arith.addf %37, %74 : vector<32x128xf32>
    %c7 = arith.constant 7 : index
    %c0_43 = arith.constant 0 : index
    %76 = vector.load %arg1[%c7, %c0_43] : memref<11x128xi32, #tpu.memory_space<vmem>>, vector<1x128xi32>
    %77 = vector.broadcast %76 : vector<1x128xi32> to vector<128x128xi32>
    %78 = arith.cmpi eq, %1, %77 : vector<128x128xi32>
    %c7_44 = arith.constant 7 : index
    %c0_45 = arith.constant 0 : index
    %79 = vector.load %arg2[%c7_44, %c0_45] : memref<11x128xf32, #tpu.memory_space<vmem>>, vector<1x128xf32>
    %cst_46 = arith.constant 0.000000e+00 : f32
    %80 = vector.shape_cast %79 : vector<1x128xf32> to vector<1x128xf32>
    %81 = vector.broadcast %80 : vector<1x128xf32> to vector<128x128xf32>
    %82 = vector.broadcast %cst_46 : f32 to vector<128x128xf32>
    %83 = arith.select %78, %81, %82 : vector<128x128xi1>, vector<128x128xf32>
    %c8 = arith.constant 8 : index
    %c0_47 = arith.constant 0 : index
    %84 = vector.load %arg1[%c8, %c0_47] : memref<11x128xi32, #tpu.memory_space<vmem>>, vector<1x128xi32>
    %85 = vector.broadcast %84 : vector<1x128xi32> to vector<128x128xi32>
    %86 = arith.cmpi eq, %1, %85 : vector<128x128xi32>
    %c8_48 = arith.constant 8 : index
    %c0_49 = arith.constant 0 : index
    %87 = vector.load %arg2[%c8_48, %c0_49] : memref<11x128xf32, #tpu.memory_space<vmem>>, vector<1x128xf32>
    %cst_50 = arith.constant 0.000000e+00 : f32
    %88 = vector.shape_cast %87 : vector<1x128xf32> to vector<1x128xf32>
    %89 = vector.broadcast %88 : vector<1x128xf32> to vector<128x128xf32>
    %90 = vector.broadcast %cst_50 : f32 to vector<128x128xf32>
    %91 = arith.select %86, %89, %90 : vector<128x128xi1>, vector<128x128xf32>
    %92 = arith.addf %83, %91 : vector<128x128xf32>
    %c9 = arith.constant 9 : index
    %c0_51 = arith.constant 0 : index
    %93 = vector.load %arg1[%c9, %c0_51] : memref<11x128xi32, #tpu.memory_space<vmem>>, vector<1x128xi32>
    %94 = vector.broadcast %93 : vector<1x128xi32> to vector<128x128xi32>
    %95 = arith.cmpi eq, %1, %94 : vector<128x128xi32>
    %c9_52 = arith.constant 9 : index
    %c0_53 = arith.constant 0 : index
    %96 = vector.load %arg2[%c9_52, %c0_53] : memref<11x128xf32, #tpu.memory_space<vmem>>, vector<1x128xf32>
    %cst_54 = arith.constant 0.000000e+00 : f32
    %97 = vector.shape_cast %96 : vector<1x128xf32> to vector<1x128xf32>
    %98 = vector.broadcast %97 : vector<1x128xf32> to vector<128x128xf32>
    %99 = vector.broadcast %cst_54 : f32 to vector<128x128xf32>
    %100 = arith.select %95, %98, %99 : vector<128x128xi1>, vector<128x128xf32>
    %101 = arith.addf %92, %100 : vector<128x128xf32>
    %c10 = arith.constant 10 : index
    %c0_55 = arith.constant 0 : index
    %102 = vector.load %arg1[%c10, %c0_55] : memref<11x128xi32, #tpu.memory_space<vmem>>, vector<1x128xi32>
    %103 = vector.broadcast %102 : vector<1x128xi32> to vector<128x128xi32>
    %104 = arith.cmpi eq, %1, %103 : vector<128x128xi32>
    %c10_56 = arith.constant 10 : index
    %c0_57 = arith.constant 0 : index
    %105 = vector.load %arg2[%c10_56, %c0_57] : memref<11x128xf32, #tpu.memory_space<vmem>>, vector<1x128xf32>
    %cst_58 = arith.constant 0.000000e+00 : f32
    %106 = vector.shape_cast %105 : vector<1x128xf32> to vector<1x128xf32>
    %107 = vector.broadcast %106 : vector<1x128xf32> to vector<128x128xf32>
    %108 = vector.broadcast %cst_58 : f32 to vector<128x128xf32>
    %109 = arith.select %104, %107, %108 : vector<128x128xi1>, vector<128x128xf32>
    %110 = arith.addf %101, %109 : vector<128x128xf32>
    %c128 = arith.constant 128 : index
    %c0_59 = arith.constant 0 : index
    %111 = vector.load %arg4[%c128, %c0_59] : memref<160x128xf32, #tpu.memory_space<vmem>>, vector<32x128xf32>
    %cst_60 = arith.constant dense<0.000000e+00> : vector<32x128xf32>
    %112 = tpu.matmul %111, %110, %cst_60 {dimension_numbers = #tpu.dot_dimension_numbers<[1], [0], [0], [1], [0, 0, 1, 1], [], []>} : vector<32x128xf32>, vector<128x128xf32>, vector<32x128xf32> -> vector<32x128xf32>
    %113 = arith.addf %75, %112 : vector<32x128xf32>
    %c0_61 = arith.constant 0 : index
    %c0_62 = arith.constant 0 : index
    %114 = vector.load %arg6[%c0_61, %c0_62] : memref<32x1xf32, #tpu.memory_space<vmem>>, vector<32x1xf32>
    %115 = vector.broadcast %114 : vector<32x1xf32> to vector<32x128xf32>
    %116 = arith.addf %113, %115 : vector<32x128xf32>
    %cst_63 = arith.constant 0.000000e+00 : f32
    %117 = vector.broadcast %cst_63 : f32 to vector<32x128xf32>
    %118 = arith.maximumf %116, %117 : vector<32x128xf32>
    %c0_64 = arith.constant 0 : index
    %c0_65 = arith.constant 0 : index
    %119 = vector.load %arg7[%c0_64, %c0_65] : memref<1x32xf32, #tpu.memory_space<vmem>>, vector<1x32xf32>
    %cst_66 = arith.constant dense<0.000000e+00> : vector<1x128xf32>
    %120 = tpu.matmul %119, %118, %cst_66 {dimension_numbers = #tpu.dot_dimension_numbers<[1], [0], [0], [1], [0, 0, 1, 1], [], []>} : vector<1x32xf32>, vector<32x128xf32>, vector<1x128xf32> -> vector<1x128xf32>
    %121 = vector.broadcast %0 : f32 to vector<1x128xf32>
    %122 = arith.addf %120, %121 : vector<1x128xf32>
    %cst_67 = arith.constant 0.000000e+00 : f32
    %123 = vector.broadcast %cst_67 : f32 to vector<1x128xf32>
    %124 = arith.cmpf oge, %122, %123 : vector<1x128xf32>
    %cst_68 = arith.constant 0.000000e+00 : f32
    %125 = vector.broadcast %cst_68 : f32 to vector<1x128xf32>
    %126 = arith.subf %125, %122 : vector<1x128xf32>
    %127 = arith.select %124, %126, %122 : vector<1x128xi1>, vector<1x128xf32>
    %128 = math.exp %127 : vector<1x128xf32>
    %cst_69 = arith.constant 1.000000e+00 : f32
    %129 = vector.broadcast %cst_69 : f32 to vector<1x128xf32>
    %130 = arith.addf %129, %128 : vector<1x128xf32>
    %cst_70 = arith.constant 1.000000e+00 : f32
    %131 = vector.broadcast %cst_70 : f32 to vector<1x128xf32>
    %132 = arith.divf %131, %130 : vector<1x128xf32>
    %133 = arith.mulf %128, %132 : vector<1x128xf32>
    %134 = arith.select %124, %132, %133 : vector<1x128xi1>, vector<1x128xf32>
    %c0_71 = arith.constant 0 : index
    %c0_72 = arith.constant 0 : index
    %135 = vector.load %arg9[%c0_71, %c0_72] : memref<1x128xf32, #tpu.memory_space<vmem>>, vector<1x128xf32>
    tpu.vector_store %arg9[%c0_71, %c0_72], %134 {strides = array<i32>} : memref<1x128xf32, #tpu.memory_space<vmem>>, vector<1x128xf32>,
    return
  }
  func.func @transform_0(%arg0: i32) -> (i32, i32) {
    %c0_i32 = arith.constant 0 : i32
    %c0_i32_0 = arith.constant 0 : i32
    return %c0_i32, %arg0 : i32, i32
  }
  func.func @transform_1(%arg0: i32) -> (i32, i32) {
    %c0_i32 = arith.constant 0 : i32
    %c0_i32_0 = arith.constant 0 : i32
    return %c0_i32, %arg0 : i32, i32
  }
  func.func @transform_2(%arg0: i32) -> (i32, i32) {
    %c0_i32 = arith.constant 0 : i32
    %c0_i32_0 = arith.constant 0 : i32
    return %c0_i32, %arg0 : i32, i32
  }
  func.func @transform_3(%arg0: i32) -> (i32, i32) {
    %c0_i32 = arith.constant 0 : i32
    %c0_i32_0 = arith.constant 0 : i32
    %c0_i32_1 = arith.constant 0 : i32
    return %c0_i32, %c0_i32_0 : i32, i32
  }
  func.func @transform_4(%arg0: i32) -> (i32, i32) {
    %c0_i32 = arith.constant 0 : i32
    %c0_i32_0 = arith.constant 0 : i32
    %c0_i32_1 = arith.constant 0 : i32
    return %c0_i32, %c0_i32_0 : i32, i32
  }
  func.func @transform_5(%arg0: i32) -> (i32, i32) {
    %c0_i32 = arith.constant 0 : i32
    %c0_i32_0 = arith.constant 0 : i32
    %c0_i32_1 = arith.constant 0 : i32
    return %c0_i32, %c0_i32_0 : i32, i32
  }
  func.func @transform_6(%arg0: i32) -> (i32, i32) {
    %c0_i32 = arith.constant 0 : i32
    %c0_i32_0 = arith.constant 0 : i32
    %c0_i32_1 = arith.constant 0 : i32
    return %c0_i32, %c0_i32_0 : i32, i32
  }
  func.func @transform_7(%arg0: i32) -> (i32, i32) {
    %c0_i32 = arith.constant 0 : i32
    %c0_i32_0 = arith.constant 0 : i32
    %c0_i32_1 = arith.constant 0 : i32
    return %c0_i32, %c0_i32_0 : i32, i32
  }
  func.func @transform_8(%arg0: i32) -> (i32, i32) {
    %c0_i32 = arith.constant 0 : i32
    %c0_i32_0 = arith.constant 0 : i32
    return %c0_i32, %arg0 : i32, i32
  }
}

</mosaic_0001>

<bundles_post_ra>
// kernel: tpu_custom_call.1
= control target key start
LH: loop header
LB: loop body
LE: loop exit
PB: predicated region body
PF: predicated region fallthrough
CT: control target
= control target key end

     0   :  { %14 = vsyncpa [#allocation4], 0  ;;  %s3115_s0 = inlined_call_operand.vmem [shape: s32[11,128], index: 0, kind: input, shape index: {}]   ;;  %s3116_s1 = inlined_call_operand.vmem [shape: f32[11,128], index: 1, kind: input, shape index: {}]   ;;  %s3117_s2 = inlined_call_operand.vmem [shape: f32[5,128], index: 2, kind: input, shape index: {}]   ;;  %s3118_s3 = inlined_call_operand.hbm [shape: f32[160,128], index: 3, kind: input, shape index: {}]   ;;  %s3119_s4 = inlined_call_operand.vmem [shape: f32[32,5], index: 4, kind: input, shape index: {}]   ;;  %s3120_s5 = inlined_call_operand.vmem [shape: f32[32,1], index: 5, kind: input, shape index: {}]   ;;  %s3121_s6 = inlined_call_operand.vmem [shape: f32[1,32], index: 6, kind: input, shape index: {}]   ;;  %s3122_s7 = inlined_call_operand.<no memory space> [shape: f32[1,1], index: 7, kind: input, shape index: {}]   ;;  %s3123_s8 = inlined_call_operand.hbm [shape: f32[1,128], index: 8, kind: output, shape index: {}]  }
   0x1   :  { %15 = vsyncpa [#allocation5], 0  ;;  %s2014_s27 = smov [#allocation3]   ;;  %s1966_s9 = scalar_lea.hbm %s3118_s3, 2560 }
   0x2   :  { %s27_s28 = sshll.u32 %s2014_s27, 4  ;;  %p1967_p0 = scmp.ne.s32.totalorder %s3118_s3, %s1966_s9  ;;  %s28_s28 = int_to_ptr.vmem [resolvable:$true] %s27_s28 }
   0x3   :  { %p1970_p1 = scmp.lt.u32.totalorder %s1966_s9, %s3118_s3 }
   0x5   :  { %p1972_p2 = pnand %p1970_p1, %p1967_p0 }
   0x7   :  { %1975 = shalt.err (!%p1972_p2)
}
   0x8   :  { %s1976_s14 = scalar_lea.vmem %s28_s28, 2560  ;;  %p1981_p4 = scmp.lt.s32.totalorder %s28_s28, %s28_s28 }
   0x9   :  { %p1977_p3 = scmp.ne.s32.totalorder %s28_s28, %s1976_s14  ;;  %p1982_p5 = scmp.lt.s32.totalorder %s1976_s14, %s1976_s14 }
   0xb   :  { %p1983_p6 = por %p1982_p5, %p1981_p4 }
   0xd   :  { %p1984_p7 = pnand %p1983_p6, %p1977_p3 }
   0xf   :  { %1987 = shalt.err (!%p1984_p7)
}
  0x10   :  { %s2015_s15 = smov 128   ;;  %s2016_s16 = smov 8  }
  0x11   :  { %33 = dma.hbm_to_vmem [thread:$0]  %s3118_s3, 2560, %s28_s28, [#allocation4], %s2015_s15, %s2015_s15, %s2016_s16  }
  0x12   :  { %2010 = dma.done.wait [#allocation4], 2560  }
  0x13   :  { %2011 = vsyncadd [#allocation4], 4294964736  ;;  %v46_v0 = vlaneseq  ;;  %v2017_v1 = vmov 0   ;;  %v2111_v12 = vld [vmem:[%s3115_s0] ss:$0 sm:$0xff]  ;;  %v1191_v24 = vld [vmem:[%s3120_s5 + $0x10] sm:$0xff] }
  0x14   :  { %1960 = vset.pattern.permute.xlu0 %v2017_v1  ;;  %1961 = vset.pattern.permute.xlu1 %v2017_v1  ;;  %v1324_v13 = vld [vmem:[%s3116_s1] ss:$0 sm:$0xff]  ;;  %v2119_v14 = vld [vmem:[%s3115_s0 + $0x2] ss:$0 sm:$0xff]  ;;  %v2193_v27 = vld [vmem:[%s3115_s0 + $0x3] ss:$0 sm:$0xff] }
  0x15   :  { %v2079_v2 = vshrl.u32 %v46_v0, 7  ;;  %v2125_v15 = vpack.c.bf16 %v1324_v13, %v1324_v13  ;;  %v1365_v16 = vld [vmem:[%s3116_s1 + $0x2] ss:$0 sm:$0xff]  ;;  %v2213_v29 = vld [vmem:[%s3116_s1 + $0x3] ss:$0 sm:$0xff]  ;;  %1205 = vperm.xlu1 %1961, %v1191_v24   ;;  %v1192_v48 = vld [vmem:[%s3120_s5 + $0x18] sm:$0xff] }
  0x16   :  { %v110_v17 = vld [vmem:[#allocation3] sm:$0xff]  ;;  %v2134_v18 = vpack.c.bf16 %v1365_v16, %v1365_v16  ;;  %v479_v24 = vld [vmem:[#allocation3 + $0x48] sm:$0xff]  ;;  %v112_v28 = vld [vmem:[#allocation3 + $0x10] sm:$0xff] }
  0x17   :  { %v2082_v3 = vadd.s32 8, %v2079_v2  ;;  %v2085_v4 = vadd.s32 16, %v2079_v2  ;;  %v2088_v5 = vadd.s32 24, %v2079_v2  ;;  %v2091_v6 = vadd.s32 32, %v2079_v2  ;;  %1541 = vmatprep.mubr.f32.mxu1 %v110_v17  ;;  %v478_v22 = vld [vmem:[#allocation3 + $0x40] sm:$0xff] }
  0x18   :  { %v2094_v7 = vadd.s32 40, %v2079_v2  ;;  %v2097_v8 = vadd.s32 48, %v2079_v2  ;;  %v2100_v9 = vadd.s32 56, %v2079_v2  ;;  %v2103_v10 = vadd.s32 64, %v2079_v2  ;;  %1625 = vmatprep.mubr.f32.mxu0 %v478_v22  ;;  %v2218_v30 = vld [vmem:[%s3115_s0 + $0x4] ss:$0 sm:$0xff] }
  0x19   :  { %v2106_v11 = vadd.s32 72, %v2079_v2  ;;  %vm73_vm0 = vcmp.eq.s32.totalorder %v2079_v2, %v2111_v12  ;;  %vm74_vm1 = vcmp.eq.s32.totalorder %v2082_v3, %v2111_v12  ;;  %vm441_vm2 = vcmp.eq.s32.totalorder %v2079_v2, %v2119_v14  ;;  %v2234_v31 = vld [vmem:[%s3116_s1 + $0x4] ss:$0 sm:$0xff]  ;;  %v2254_v33 = vld [vmem:[%s3115_s0 + $0x5] ss:$0 sm:$0xff]  ;;  %1210 = vperm.xlu1 %1961, %v1192_v48  }
  0x1a   :  { %vm1719_vm3 = vmpackc.low %vm74_vm1, %vm73_vm0  ;;  %vm442_vm4 = vcmp.eq.s32.totalorder %v2082_v3, %v2119_v14  ;;  %vm75_vm5 = vcmp.eq.s32.totalorder %v2085_v4, %v2111_v12  ;;  %vm76_vm6 = vcmp.eq.s32.totalorder %v2088_v5, %v2111_v12  ;;  %vm443_vm8 = vcmp.eq.s32.totalorder %v2085_v4, %v2119_v14  ;;  %v2279_v36 = vld [vmem:[%s3116_s1 + $0x5] ss:$0 sm:$0xff]  ;;  %v2284_v37 = vld [vmem:[%s3115_s0 + $0x6] ss:$0 sm:$0xff] }
  0x1b   :  { %1720 = vmatprep.subr.msk.bf16.mxu1 %vm1719_vm3, %v2125_v15  ;;  %vm1815_vm7 = vmpackc.low %vm442_vm4, %vm441_vm2  ;;  %vm444_vm9 = vcmp.eq.s32.totalorder %v2088_v5, %v2119_v14  ;;  %vm77_vm10 = vcmp.eq.s32.totalorder %v2091_v6, %v2111_v12  ;;  %vm78_vm11 = vcmp.eq.s32.totalorder %v2094_v7, %v2111_v12  ;;  %vm445_vm13 = vcmp.eq.s32.totalorder %v2091_v6, %v2119_v14  ;;  %v2308_v42 = vld [vmem:[%s3116_s1 + $0x6] ss:$0 sm:$0xff]  ;;  %v2435_v22 = vld [vmem:[%s3115_s0 + $0x1] ss:$0 sm:$0xff] }
  0x1c   :  { %1816 = vmatprep.subr.msk.bf16.mxu0 %vm1815_vm7, %v2134_v18  ;;  %1723 = vmatpush3.bf16.msk.msra.mxu1 %vm1719_vm3, %v2125_v15  ;;  %vm2151_vm12 = vmpackc.low %vm76_vm6, %vm75_vm5  ;;  %vm446_vm14 = vcmp.eq.s32.totalorder %v2094_v7, %v2119_v14  ;;  %v2160_v20 = vadd.s32 80, %v2079_v2  ;;  %v2163_v21 = vadd.s32 88, %v2079_v2  ;;  %vm79_vm1 = vcmp.eq.s32.totalorder %v2097_v8, %v2111_v12  ;;  %v1189_v23 = vld [vmem:[%s3120_s5] sm:$0xff] }
  0x1d   :  { %1819 = vmatpush3.bf16.msk.msra.mxu0 %vm1815_vm7, %v2134_v18  ;;  %1726 = vmatprep.subr.msk.bf16.mxu1 %vm2151_vm12, %v2125_v15  ;;  %vm2169_vm15 = vmpackc.low %vm444_vm9, %vm443_vm8  ;;  %vm80_vm2 = vcmp.eq.s32.totalorder %v2100_v9, %v2111_v12  ;;  %v2185_v25 = vadd.s32 96, %v2079_v2  ;;  %v2188_v26 = vadd.s32 104, %v2079_v2  ;;  %vm447_vm4 = vcmp.eq.s32.totalorder %v2097_v8, %v2119_v14 }
  0x1e   :  { %1822 = vmatprep.subr.msk.bf16.mxu0 %vm2169_vm15, %v2134_v18  ;;  %vm2176_vm0 = vmpackc.low %vm78_vm11, %vm77_vm10  ;;  %vm448_vm5 = vcmp.eq.s32.totalorder %v2100_v9, %v2119_v14  ;;  %vm81_vm6 = vcmp.eq.s32.totalorder %v2103_v10, %v2111_v12  ;;  %vm82_vm7 = vcmp.eq.s32.totalorder %v2106_v11, %v2111_v12  ;;  %vm449_vm8 = vcmp.eq.s32.totalorder %v2103_v10, %v2119_v14 }
  0x1f   :  { %vm2198_vm3 = vmpackc.low %vm446_vm14, %vm445_vm13  ;;  %vm450_vm9 = vcmp.eq.s32.totalorder %v2106_v11, %v2119_v14  ;;  %vm83_vm10 = vcmp.eq.s32.totalorder %v2160_v20, %v2111_v12  ;;  %v2247_v32 = vadd.s32 112, %v2079_v2  ;;  %vm576_vm14 = vcmp.eq.s32.totalorder %v2079_v2, %v2193_v27  ;;  %1195 = vperm.xlu0 %1960, %v1189_v23  }
  0x20   :  { %1729 = vmatpush3.bf16.msk.msra.mxu1 %vm2151_vm12, %v2125_v15  ;;  %vm577_vm13 = vcmp.eq.s32.totalorder %v2082_v3, %v2193_v27  ;;  %v597_v35 = vsel %vm576_vm14, %v2213_v29, 0.0  ;;  %vm618_vm12 = vcmp.eq.s32.totalorder %v2079_v2, %v2218_v30  ;;  %vm619_vm11 = vcmp.eq.s32.totalorder %v2082_v3, %v2218_v30 }
  0x21   :  { %1825 = vmatpush3.bf16.msk.msra.mxu0 %vm2169_vm15, %v2134_v18  ;;  %1732 = vmatprep.subr.msk.bf16.mxu1 %vm2176_vm0, %v2125_v15  ;;  %vm2265_vm15 = vmpackc.low %vm80_vm2, %vm79_vm1  ;;  %vm85_vm2 = vcmp.eq.s32.totalorder %v2185_v25, %v2111_v12  ;;  %vm86_vm14 = vcmp.eq.s32.totalorder %v2188_v26, %v2111_v12  ;;  %v2301_v39 = vadd.s32 120, %v2079_v2  ;;  %v598_v40 = vsel %vm577_vm13, %v2213_v29, 0.0 }
  0x22   :  { %1828 = vmatprep.subr.msk.bf16.mxu0 %vm2198_vm3, %v2134_v18  ;;  %vm2292_vm1 = vmpackc.low %vm448_vm5, %vm447_vm4  ;;  %v639_v41 = vsel %vm618_vm12, %v2234_v31, 0.0  ;;  %vm453_vm4 = vcmp.eq.s32.totalorder %v2185_v25, %v2119_v14  ;;  %v640_v43 = vsel %vm619_vm11, %v2234_v31, 0.0  ;;  %vm676_vm5 = vcmp.eq.s32.totalorder %v2079_v2, %v2254_v33 }
  0x23   :  { %v655_v44 = vadd.f32 %v639_v41, %v597_v35  ;;  %vm677_vm12 = vcmp.eq.s32.totalorder %v2082_v3, %v2254_v33  ;;  %v656_v45 = vadd.f32 %v640_v43, %v598_v40  ;;  %v697_v46 = vsel %vm676_vm5, %v2279_v36, 0.0  ;;  %vm2354_vm5 = vmpackc.low %vm450_vm9, %vm449_vm8  ;;  %v1347_v40 = vld [vmem:[%s3116_s1 + $0x1] ss:$0 sm:$0xff] }
  0x24   :  { %1735 = vmatpush3.bf16.msk.msra.mxu1 %vm2176_vm0, %v2125_v15  ;;  %v698_v47 = vsel %vm677_vm12, %v2279_v36, 0.0  ;;  %vm734_vm0 = vcmp.eq.s32.totalorder %v2079_v2, %v2284_v37  ;;  %vm735_vm11 = vcmp.eq.s32.totalorder %v2082_v3, %v2284_v37  ;;  %vm578_vm13 = vcmp.eq.s32.totalorder %v2085_v4, %v2193_v27 }
  0x25   :  { %1831 = vmatpush3.bf16.msk.msra.mxu0 %vm2198_vm3, %v2134_v18  ;;  %1738 = vmatprep.subr.msk.bf16.mxu1 %vm2265_vm15, %v2125_v15  ;;  %vm2339_vm3 = vmpackc.low %vm82_vm7, %vm81_vm6  ;;  %v713_v49 = vadd.f32 %v697_v46, %v655_v44  ;;  %v755_v50 = vsel %vm734_vm0, %v2308_v42, 0.0  ;;  %v714_v52 = vadd.f32 %v698_v47, %v656_v45  ;;  %v756_v53 = vsel %vm735_vm11, %v2308_v42, 0.0  ;;  %v1190_v47 = vld [vmem:[%s3120_s5 + $0x8] sm:$0xff] }
  0x26   :  { %1834 = vmatprep.subr.msk.bf16.mxu0 %vm2292_vm1, %v2134_v18  ;;  %vm579_vm6 = vcmp.eq.s32.totalorder %v2088_v5, %v2193_v27  ;;  %v599_v54 = vsel %vm578_vm13, %v2213_v29, 0.0  ;;  %vm620_vm7 = vcmp.eq.s32.totalorder %v2085_v4, %v2218_v30  ;;  %vm621_vm8 = vcmp.eq.s32.totalorder %v2088_v5, %v2218_v30  ;;  %1200 = vperm.xlu0 %1960, %v1190_v47  }
  0x27   :  { %v771_v55 = vadd.f32 %v755_v50, %v713_v49  ;;  %v600_v56 = vsel %vm579_vm6, %v2213_v29, 0.0  ;;  %v772_v57 = vadd.f32 %v756_v53, %v714_v52  ;;  %v641_v58 = vsel %vm620_vm7, %v2234_v31, 0.0 }
  0x28   :  { %1741 = vmatpush3.bf16.msk.msra.mxu1 %vm2265_vm15, %v2125_v15  ;;  %v642_v59 = vsel %vm621_vm8, %v2234_v31, 0.0  ;;  %vm678_vm9 = vcmp.eq.s32.totalorder %v2085_v4, %v2254_v33  ;;  %vm3140_vm15 = vcmp.eq.s32.totalorder %v2163_v21, %v2111_v12  ;;  %v657_v61 = vadd.f32 %v641_v58, %v599_v54 }
  0x29   :  { %1837 = vmatpush3.bf16.msk.msra.mxu0 %vm2292_vm1, %v2134_v18  ;;  %1744 = vmatprep.subr.msk.bf16.mxu1 %vm2339_vm3, %v2125_v15  ;;  %vm2389_vm1 = vmpackc.low %vm3140_vm15, %vm83_vm10  ;;  %v658_v62 = vadd.f32 %v642_v59, %v600_v56  ;;  %vm679_vm12 = vcmp.eq.s32.totalorder %v2088_v5, %v2254_v33  ;;  %v699_v63 = vsel %vm678_vm9, %v2279_v36, 0.0  ;;  %vm3143_vm0 = vcmp.eq.s32.totalorder %v2160_v20, %v2119_v14 }
  0x2a   :  { %1840 = vmatprep.subr.msk.bf16.mxu0 %vm2354_vm5, %v2134_v18  ;;  %vm3144_vm11 = vcmp.eq.s32.totalorder %v2163_v21, %v2119_v14  ;;  %vm454_vm10 = vcmp.eq.s32.totalorder %v2188_v26, %v2119_v14  ;;  %v700_v1 = vsel %vm679_vm12, %v2279_v36, 0.0  ;;  %vm736_vm6 = vcmp.eq.s32.totalorder %v2085_v4, %v2284_v37 }
  0x2b   :  { %vm2402_vm13 = vmpackc.low %vm3144_vm11, %vm3143_vm0  ;;  %vm737_vm7 = vcmp.eq.s32.totalorder %v2088_v5, %v2284_v37  ;;  %vm87_vm8 = vcmp.eq.s32.totalorder %v2247_v32, %v2111_v12  ;;  %v715_v13 = vadd.f32 %v699_v63, %v657_v61  ;;  %v716_v16 = vadd.f32 %v700_v1, %v658_v62  ;;  %v67_v63 = vld [vmem:[%s3117_s2] sm:$0x1f]  ;;  %s2021_s2 = smov [#allocation6]  }
  0x2c   :  { %1747 = vmatpush3.bf16.msk.msra.mxu1 %vm2339_vm3, %v2125_v15  ;;  %v757_v17 = vsel %vm736_vm6, %v2308_v42, 0.0  ;;  %vm88_vm9 = vcmp.eq.s32.totalorder %v2301_v39, %v2111_v12  ;;  %vm455_vm3 = vcmp.eq.s32.totalorder %v2247_v32, %v2119_v14  ;;  %vm456_vm15 = vcmp.eq.s32.totalorder %v2301_v39, %v2119_v14  ;;  %v481_v12 = vld [vmem:[#allocation3 + $0x58] sm:$0xff]  ;;  %s1314_s10 = sshll.u32 %s2021_s2, 4  ;;  %s1315_s10 = int_to_ptr.vmem [resolvable:$true] %s1314_s10 }
  0x2d   :  { %1843 = vmatpush3.bf16.msk.msra.mxu0 %vm2354_vm5, %v2134_v18  ;;  %1750 = vmatprep.subr.msk.bf16.mxu1 %vm2389_vm1, %v2125_v15  ;;  %v758_v19 = vsel %vm737_vm7, %v2308_v42, 0.0  ;;  %vm2452_vm5 = vmpackc.low %vm86_vm14, %vm85_vm2  ;;  %v2456_v34 = vpack.c.bf16 %v772_v57, %v771_v55  ;;  %v773_v35 = vadd.f32 %v757_v17, %v715_v13  ;;  %vm212_vm12 = vcmask 1044480   ;;  %v111_v17 = vld [vmem:[#allocation3 + $0x8] sm:$0xff]  ;;  %p1993_p9 = scmp.lt.s32.totalorder %s1315_s10, %s1315_s10 }
  0x2e   :  { %1846 = vmatprep.subr.msk.bf16.mxu0 %vm2402_vm13, %v2134_v18  ;;  %vm580_vm0 = vcmp.eq.s32.totalorder %v2091_v6, %v2193_v27  ;;  %vm581_vm11 = vcmp.eq.s32.totalorder %v2094_v7, %v2193_v27  ;;  %vm2468_vm2 = vmpackc.low %vm454_vm10, %vm453_vm4  ;;  %vm622_vm14 = vcmp.eq.s32.totalorder %v2091_v6, %v2218_v30  ;;  %vm623_vm6 = vcmp.eq.s32.totalorder %v2094_v7, %v2218_v30 }
  0x2f   :  { %v601_v41 = vsel %vm580_vm0, %v2213_v29, 0.0  ;;  %v602_v43 = vsel %vm581_vm11, %v2213_v29, 0.0  ;;  %v774_v44 = vadd.f32 %v758_v19, %v716_v16  ;;  %vm306_vm4 = vcmp.eq.s32.totalorder %v2079_v2, %v2435_v22 }
  0x30   :  { %1753 = vmatpush3.bf16.msk.msra.mxu1 %vm2389_vm1, %v2125_v15  ;;  %vm307_vm10 = vcmp.eq.s32.totalorder %v2082_v3, %v2435_v22  ;;  %v643_v45 = vsel %vm622_vm14, %v2234_v31, 0.0  ;;  %v644_v46 = vsel %vm623_vm6, %v2234_v31, 0.0  ;;  %vm680_vm7 = vcmp.eq.s32.totalorder %v2091_v6, %v2254_v33 }
  0x31   :  { %1849 = vmatpush3.bf16.msk.msra.mxu0 %vm2402_vm13, %v2134_v18  ;;  %1756 = vmatprep.subr.msk.bf16.mxu1 %vm2452_vm5, %v2125_v15  ;;  %v659_v49 = vadd.f32 %v643_v45, %v601_v41  ;;  %v660_v50 = vadd.f32 %v644_v46, %v602_v43  ;;  %vm681_vm1 = vcmp.eq.s32.totalorder %v2094_v7, %v2254_v33  ;;  %v701_v51 = vsel %vm680_vm7, %v2279_v36, 0.0  ;;  %vm2516_vm13 = vmpackc.low %vm88_vm9, %vm87_vm8  ;;  %v113_v46 = vld [vmem:[#allocation3 + $0x18] sm:$0xff] }
  0x32   :  { %1852 = vmatprep.subr.msk.bf16.mxu0 %vm2468_vm2, %v2134_v18  ;;  %v2520_v53 = vpack.c.bf16 %v1347_v40, %v1347_v40  ;;  %v702_v54 = vsel %vm681_vm1, %v2279_v36, 0.0  ;;  %vm738_vm0 = vcmp.eq.s32.totalorder %v2091_v6, %v2284_v37  ;;  %vm739_vm11 = vcmp.eq.s32.totalorder %v2094_v7, %v2284_v37  ;;  %vm2533_vm8 = vmpackc.low %vm456_vm15, %vm455_vm3 }
  0x33   :  { %v717_v55 = vadd.f32 %v701_v51, %v659_v49  ;;  %v718_v56 = vadd.f32 %v702_v54, %v660_v50  ;;  %v759_v57 = vsel %vm738_vm0, %v2308_v42, 0.0  ;;  %v760_v58 = vsel %vm739_vm11, %v2308_v42, 0.0  ;;  %v480_v49 = vld [vmem:[#allocation3 + $0x50] sm:$0xff]  ;;  %v63_v50 = vld [vmem:[%s3119_s4] sm:$0xff] }
  0x34   :  { %1759 = vmatpush3.bf16.msk.msra.mxu1 %vm2452_vm5, %v2125_v15  ;;  %v2542_v59 = vpack.c.bf16 %v774_v44, %v773_v35  ;;  %vm582_vm9 = vcmp.eq.s32.totalorder %v2097_v8, %v2193_v27  ;;  %vm583_vm3 = vcmp.eq.s32.totalorder %v2100_v9, %v2193_v27  ;;  %vm624_vm15 = vcmp.eq.s32.totalorder %v2097_v8, %v2218_v30 }
  0x35   :  { %1855 = vmatpush3.bf16.msk.msra.mxu0 %vm2468_vm2, %v2134_v18  ;;  %1762 = vmatprep.subr.msk.bf16.mxu1 %vm2516_vm13, %v2125_v15  ;;  %vm199_vm5 = vcmask 39936   ;;  %v775_v14 = vadd.f32 %v759_v57, %v717_v55  ;;  %v776_v60 = vadd.f32 %v760_v58, %v718_v56  ;;  %v603_v61 = vsel %vm582_vm9, %v2213_v29, 0.0  ;;  %vm2604_vm9 = vmpackc.low %vm307_vm10, %vm306_vm4  ;;  %v787_v57 = vld [vmem:[#allocation3 + $0x60] sm:$0xff] }
  0x36   :  { %v604_v62 = vsel %vm583_vm3, %v2213_v29, 0.0  ;;  %1858 = vmatprep.subr.msk.bf16.mxu0 %vm2533_vm8, %v2134_v18  ;;  %vm625_vm2 = vcmp.eq.s32.totalorder %v2100_v9, %v2218_v30  ;;  %v645_v0 = vsel %vm624_vm15, %v2234_v31, 0.0  ;;  %vm682_vm14 = vcmp.eq.s32.totalorder %v2097_v8, %v2254_v33 }
  0x37   :  { %vm683_vm6 = vcmp.eq.s32.totalorder %v2100_v9, %v2254_v33  ;;  %vm308_vm7 = vcmp.eq.s32.totalorder %v2085_v4, %v2435_v22  ;;  %v646_v1 = vsel %vm625_vm2, %v2234_v31, 0.0  ;;  %v661_v13 = vadd.f32 %v645_v0, %v603_v61 }
  0x38   :  { %v703_v16 = vsel %vm682_vm14, %v2279_v36, 0.0  ;;  %1765 = vmatpush3.bf16.msk.msra.mxu1 %vm2516_vm13, %v2125_v15  ;;  %v662_v19 = vadd.f32 %v646_v1, %v604_v62  ;;  %v704_v23 = vsel %vm683_vm6, %v2279_v36, 0.0  ;;  %vm740_vm1 = vcmp.eq.s32.totalorder %v2097_v8, %v2284_v37  ;;  %v65_v1 = vld [vmem:[%s3119_s4 + $0x10] sm:$0xff] }
  0x39   :  { %vm741_vm0 = vcmp.eq.s32.totalorder %v2100_v9, %v2284_v37  ;;  %1861 = vmatpush3.bf16.msk.msra.mxu0 %vm2533_vm8, %v2134_v18  ;;  %1547 = vmatprep.subr.msk.mxu1 %vm212_vm12, %v67_v63  ;;  %vm309_vm13 = vcmp.eq.s32.totalorder %v2088_v5, %v2435_v22  ;;  %v719_v15 = vadd.f32 %v703_v16, %v661_v13  ;;  %v761_v35 = vsel %vm740_vm1, %v2308_v42, 0.0  ;;  %v343_v18 = vld [vmem:[#allocation3 + $0x20] sm:$0xff] }
  0x3a   :  { %v762_v38 = vsel %vm741_vm0, %v2308_v42, 0.0  ;;  %1863 = vmatprep.subr.bf16.mxu0 %v2456_v34  ;;  %v2592_v40 = vpack.c.bf16 %v776_v60, %v775_v14  ;;  %v720_v41 = vadd.f32 %v704_v23, %v662_v19  ;;  %vm584_vm11 = vcmp.eq.s32.totalorder %v2103_v10, %v2193_v27  ;;  %v64_v60 = vld [vmem:[%s3119_s4 + $0x8] sm:$0xff] }
  0x3b   :  { %vm585_vm8 = vcmp.eq.s32.totalorder %v2106_v11, %v2193_v27  ;;  %1542 = vmatmul.mubr.f32.vlgmr.msra.gmra.mrb[0].mxu1 %v111_v17  ;;  %v777_v43 = vadd.f32 %v761_v35, %v719_v15  ;;  %vm310_vm3 = vcmp.eq.s32.totalorder %v2091_v6, %v2435_v22  ;;  %vm311_vm15 = vcmp.eq.s32.totalorder %v2094_v7, %v2435_v22 }
  0x3c   :  { %v605_v44 = vsel %vm584_vm11, %v2213_v29, 0.0  ;;  %v606_v45 = vsel %vm585_vm8, %v2213_v29, 0.0  ;;  %vm626_vm2 = vcmp.eq.s32.totalorder %v2103_v10, %v2218_v30  ;;  %1626 = vmatmul.mubr.f32.vlgmr.msra.gmra.mrb[0].mxu0 %v479_v24  ;;  %1544 = vmatprep.mubr.f32.mxu1 %v112_v28  ;;  %v778_v47 = vadd.f32 %v762_v38, %v720_v41  ;;  %v66_v38 = vld [vmem:[%s3119_s4 + $0x18] sm:$0xff] }
  0x3d   :  { %vm627_vm4 = vcmp.eq.s32.totalorder %v2106_v11, %v2218_v30  ;;  %v647_v48 = vsel %vm626_vm2, %v2234_v31, 0.0  ;;  %vm684_vm10 = vcmp.eq.s32.totalorder %v2103_v10, %v2254_v33  ;;  %1865 = vmatpush3.bf16.msra.mxu0 %v2456_v34  ;;  %1548 = vmatpush3.msk.msra.mxu1 %vm212_vm12, %v67_v63  ;;  %vm685_vm14 = vcmp.eq.s32.totalorder %v2106_v11, %v2254_v33 }
  0x3e   :  { %v648_v51 = vsel %vm627_vm4, %v2234_v31, 0.0  ;;  %v663_v52 = vadd.f32 %v647_v48, %v605_v44  ;;  %v705_v54 = vsel %vm684_vm10, %v2279_v36, 0.0  ;;  %1867 = vmatprep.subr.bf16.mxu0 %v2542_v59  ;;  %1768 = vmatprep.subr.msk.bf16.mxu1 %vm2604_vm9, %v2520_v53  ;;  %v2634_v34 = vpack.c.bf16 %v778_v47, %v777_v43  ;;  %vm2669_vm4 = vmpackc.low %vm309_vm13, %vm308_vm7 }
  0x3f   :  { %v664_v55 = vadd.f32 %v648_v51, %v606_v45  ;;  %v706_v56 = vsel %vm685_vm14, %v2279_v36, 0.0  ;;  %vm742_vm12 = vcmp.eq.s32.totalorder %v2103_v10, %v2284_v37  ;;  %1545 = vmatmul.mubr.f32.gmra.mrb[2].mxu1 %v113_v46  ;;  %vm743_vm6 = vcmp.eq.s32.totalorder %v2106_v11, %v2284_v37  ;;  %1628 = vmatprep.mubr.f32.mxu0 %v480_v49 }
  0x40   :  { %v721_v58 = vadd.f32 %v705_v54, %v663_v52  ;;  %v763_v14 = vsel %vm742_vm12, %v2308_v42, 0.0  ;;  %vm312_vm1 = vcmp.eq.s32.totalorder %v2097_v8, %v2435_v22  ;;  %1549 = vmatprep.mubr.msk.f32.mxu1 %vm199_vm5, %v63_v50  ;;  %v764_v62 = vsel %vm743_vm6, %v2308_v42, 0.0  ;;  %1629 = vmatmul.mubr.f32.gmra.mrb[2].mxu0 %v481_v12  ;;  %vm2707_vm12 = vmpackc.low %vm311_vm15, %vm310_vm3 }
  0x41   :  { %v722_v61 = vadd.f32 %v706_v56, %v664_v55  ;;  %vm313_vm0 = vcmp.eq.s32.totalorder %v2100_v9, %v2435_v22  ;;  %vm586_vm11 = vcmp.eq.s32.totalorder %v2160_v20, %v2193_v27  ;;  %1869 = vmatpush3.bf16.msra.mxu0 %v2542_v59  ;;  %vm587_vm8 = vcmp.eq.s32.totalorder %v2163_v21, %v2193_v27 }
  0x42   :  { %v779_v63 = vadd.f32 %v763_v14, %v721_v58  ;;  %v607_v0 = vsel %vm586_vm11, %v2213_v29, 0.0  ;;  %vm628_vm2 = vcmp.eq.s32.totalorder %v2160_v20, %v2218_v30  ;;  %1663 = vmatprep.mubr.f32.mxu0 %v787_v57  ;;  %1871 = vmatprep.subr.bf16.mxu0 %v2592_v40  ;;  %v608_v16 = vsel %vm587_vm8, %v2213_v29, 0.0 }
  0x43   :  { %v780_v13 = vadd.f32 %v764_v62, %v722_v61  ;;  %vm629_vm10 = vcmp.eq.s32.totalorder %v2163_v21, %v2218_v30  ;;  %v649_v17 = vsel %vm628_vm2, %v2234_v31, 0.0  ;;  %1550 = vmatmul.mubr.msk.f32.vlgmr.msra.gmra.mrb[0].mxu1 %vm199_vm5, %v64_v60  ;;  %vm686_vm14 = vcmp.eq.s32.totalorder %v2160_v20, %v2254_v33 }
  0x44   :  { %v650_v19 = vsel %vm629_vm10, %v2234_v31, 0.0  ;;  %v665_v23 = vadd.f32 %v649_v17, %v607_v0  ;;  %vm687_vm7 = vcmp.eq.s32.totalorder %v2163_v21, %v2254_v33  ;;  %1771 = vmatpush3.bf16.msk.msra.mxu1 %vm2604_vm9, %v2520_v53  ;;  %v707_v15 = vsel %vm686_vm14, %v2279_v36, 0.0  ;;  %1552 = vmatprep.mubr.msk.f32.mxu1 %vm199_vm5, %v65_v1  ;;  %vm2746_vm10 = vmpackc.low %vm313_vm0, %vm312_vm1 }
  0x45   :  { %v1878_v24 = vpack.c.bf16 %v780_v13, %v779_v63  ;;  %v666_v28 = vadd.f32 %v650_v19, %v608_v16  ;;  %v708_v35 = vsel %vm687_vm7, %v2279_v36, 0.0  ;;  %1873 = vmatpush3.bf16.msra.mxu0 %v2592_v40  ;;  %1774 = vmatprep.subr.msk.bf16.mxu1 %vm2669_vm4, %v2520_v53  ;;  %vm744_vm13 = vcmp.eq.s32.totalorder %v2160_v20, %v2284_v37 }
  0x46   :  { %v723_v41 = vadd.f32 %v707_v15, %v665_v23  ;;  %vm745_vm9 = vcmp.eq.s32.totalorder %v2163_v21, %v2284_v37  ;;  %1875 = vmatprep.subr.bf16.mxu0 %v2634_v34  ;;  %v765_v44 = vsel %vm744_vm13, %v2308_v42, 0.0  ;;  %vm314_vm6 = vcmp.eq.s32.totalorder %v2103_v10, %v2435_v22  ;;  %v2832_v23 = vld [vmem:[%s3116_s1 + $0x7] ss:$0 sm:$0xff] }
  0x47   :  { %v724_v43 = vadd.f32 %v708_v35, %v666_v28  ;;  %v766_v45 = vsel %vm745_vm9, %v2308_v42, 0.0  ;;  %vm315_vm11 = vcmp.eq.s32.totalorder %v2106_v11, %v2435_v22  ;;  %vm588_vm8 = vcmp.eq.s32.totalorder %v2185_v25, %v2193_v27  ;;  %1553 = vmatmul.mubr.msk.f32.gmra.mrb[2].mxu1 %vm199_vm5, %v66_v38  ;;  %v2846_v35 = vld [vmem:[%s3115_s0 + $0x9] ss:$0 sm:$0xff] }
  0x48   :  { %v781_v46 = vadd.f32 %v765_v44, %v723_v41  ;;  %vm589_vm3 = vcmp.eq.s32.totalorder %v2188_v26, %v2193_v27  ;;  %1777 = vmatpush3.bf16.msk.msra.mxu1 %vm2669_vm4, %v2520_v53  ;;  %v609_v48 = vsel %vm588_vm8, %v2213_v29, 0.0  ;;  %vm630_vm15 = vcmp.eq.s32.totalorder %v2185_v25, %v2218_v30  ;;  %1587 = vmatprep.mubr.f32.mxu1 %v343_v18  ;;  %vm2777_vm9 = vmpackc.low %vm315_vm11, %vm314_vm6 }
  0x49   :  { %v782_v47 = vadd.f32 %v766_v45, %v724_v43  ;;  %v610_v49 = vsel %vm589_vm3, %v2213_v29, 0.0  ;;  %1877 = vmatpush3.bf16.msra.mxu0 %v2634_v34  ;;  %1780 = vmatprep.subr.msk.bf16.mxu1 %vm2707_vm12, %v2520_v53  ;;  %vm631_vm5 = vcmp.eq.s32.totalorder %v2188_v26, %v2218_v30  ;;  %v651_v50 = vsel %vm630_vm15, %v2234_v31, 0.0  ;;  %v2872_v43 = vld [vmem:[%s3115_s0 + $0xa] ss:$0 sm:$0xff] }
  0x4a   :  { %vm688_vm2 = vcmp.eq.s32.totalorder %v2185_v25, %v2254_v33  ;;  %vm689_vm4 = vcmp.eq.s32.totalorder %v2188_v26, %v2254_v33  ;;  %1879 = vmatprep.subr.bf16.mxu0 %v1878_v24  ;;  %v652_v54 = vsel %vm631_vm5, %v2234_v31, 0.0  ;;  %v667_v12 = vadd.f32 %v651_v50, %v609_v48 }
  0x4b   :  { %v1882_v52 = vpack.c.bf16 %v782_v47, %v781_v46  ;;  %v709_v34 = vsel %vm688_vm2, %v2279_v36, 0.0  ;;  %v668_v55 = vadd.f32 %v652_v54, %v610_v49  ;;  %v710_v56 = vsel %vm689_vm4, %v2279_v36, 0.0  ;;  %v2893_v47 = vld [vmem:[%s3116_s1 + $0xa] ss:$0 sm:$0xff] }
  0x4c   :  { %vm746_vm14 = vcmp.eq.s32.totalorder %v2185_v25, %v2284_v37  ;;  %vm747_vm7 = vcmp.eq.s32.totalorder %v2188_v26, %v2284_v37  ;;  %1783 = vmatpush3.bf16.msk.msra.mxu1 %vm2707_vm12, %v2520_v53  ;;  %v725_v57 = vadd.f32 %v709_v34, %v667_v12  ;;  %vm316_vm1 = vcmp.eq.s32.totalorder %v2160_v20, %v2435_v22 }
  0x4d   :  { %v767_v58 = vsel %vm746_vm14, %v2308_v42, 0.0  ;;  %v768_v14 = vsel %vm747_vm7, %v2308_v42, 0.0  ;;  %1881 = vmatpush3.bf16.msra.mxu0 %v1878_v24  ;;  %1786 = vmatprep.subr.msk.bf16.mxu1 %vm2746_vm10, %v2520_v53  ;;  %v726_v60 = vadd.f32 %v710_v56, %v668_v55  ;;  %vm317_vm0 = vcmp.eq.s32.totalorder %v2163_v21, %v2435_v22  ;;  %v788_v56 = vld [vmem:[#allocation3 + $0x68] sm:$0xff] }
  0x4e   :  { %vm590_vm13 = vcmp.eq.s32.totalorder %v2247_v32, %v2193_v27  ;;  %1883 = vmatprep.subr.bf16.mxu0 %v1882_v52  ;;  %v783_v62 = vadd.f32 %v767_v58, %v725_v57  ;;  %vm591_vm12 = vcmp.eq.s32.totalorder %v2301_v39, %v2193_v27  ;;  %vm632_vm8 = vcmp.eq.s32.totalorder %v2247_v32, %v2218_v30  ;;  %vm2819_vm15 = vmpackc.low %vm317_vm0, %vm316_vm1 }
  0x4f   :  { %v611_v63 = vsel %vm590_vm13, %v2213_v29, 0.0  ;;  %v784_v0 = vadd.f32 %v768_v14, %v726_v60  ;;  %v612_v1 = vsel %vm591_vm12, %v2213_v29, 0.0  ;;  %vm633_vm3 = vcmp.eq.s32.totalorder %v2301_v39, %v2218_v30  ;;  %v789_v60 = vld [vmem:[#allocation3 + $0x70] sm:$0xff] }
  0x50   :  { %v653_v59 = vsel %vm632_vm8, %v2234_v31, 0.0  ;;  %1789 = vmatpush3.bf16.msk.msra.mxu1 %vm2746_vm10, %v2520_v53  ;;  %v654_v13 = vsel %vm633_vm3, %v2234_v31, 0.0  ;;  %vm690_vm6 = vcmp.eq.s32.totalorder %v2247_v32, %v2254_v33  ;;  %vm691_vm11 = vcmp.eq.s32.totalorder %v2301_v39, %v2254_v33  ;;  %v2806_v31 = vld [vmem:[%s3115_s0 + $0x7] ss:$0 sm:$0xff]  ;;  %v2811_v33 = vld [vmem:[%s3115_s0 + $0x8] ss:$0 sm:$0xff] }
  0x51   :  { %v669_v27 = vadd.f32 %v653_v59, %v611_v63  ;;  %1885 = vmatpush3.bf16.msra.mxu0 %v1882_v52  ;;  %1792 = vmatprep.subr.msk.bf16.mxu1 %vm2777_vm9, %v2520_v53  ;;  %v1886_v29 = vpack.c.bf16 %v784_v0, %v783_v62  ;;  %v670_v30 = vadd.f32 %v654_v13, %v612_v1  ;;  %v711_v16 = vsel %vm690_vm6, %v2279_v36, 0.0  ;;  %v790_v13 = vld [vmem:[#allocation3 + $0x78] sm:$0xff] }
  0x52   :  { %v712_v17 = vsel %vm691_vm11, %v2279_v36, 0.0  ;;  %vm748_vm5 = vcmp.eq.s32.totalorder %v2247_v32, %v2284_v37  ;;  %vm749_vm2 = vcmp.eq.s32.totalorder %v2301_v39, %v2284_v37  ;;  %vm318_vm4 = vcmp.eq.s32.totalorder %v2185_v25, %v2435_v22  ;;  %v2841_v37 = vld [vmem:[%s3116_s1 + $0x8] ss:$0 sm:$0xff] }
  0x53   :  { %v727_v36 = vadd.f32 %v711_v16, %v669_v27  ;;  %1887 = vmatprep.subr.bf16.mxu0 %v1886_v29  ;;  %v728_v24 = vadd.f32 %v712_v17, %v670_v30  ;;  %v769_v28 = vsel %vm748_vm5, %v2308_v42, 0.0  ;;  %v770_v15 = vsel %vm749_vm2, %v2308_v42, 0.0  ;;  %v2860_v42 = vld [vmem:[%s3116_s1 + $0x9] ss:$0 sm:$0xff]  ;;  %v1096_v16 = vld [vmem:[#allocation3 + $0x80] sm:$0xff] }
  0x54   :  { %vm319_vm10 = vcmp.eq.s32.totalorder %v2188_v26, %v2435_v22  ;;  %1795 = vmatpush3.bf16.msk.msra.mxu1 %vm2777_vm9, %v2520_v53  ;;  %vm885_vm14 = vcmp.eq.s32.totalorder %v2079_v2, %v2806_v31  ;;  %vm886_vm7 = vcmp.eq.s32.totalorder %v2082_v3, %v2806_v31  ;;  %vm927_vm1 = vcmp.eq.s32.totalorder %v2079_v2, %v2811_v33  ;;  %v344_v17 = vld [vmem:[#allocation3 + $0x28] sm:$0xff] }
  0x55   :  { %v785_v38 = vadd.f32 %v769_v28, %v727_v36  ;;  %1889 = vmatpush3.bf16.msra.mxu0 %v1886_v29  ;;  %1798 = vmatprep.subr.msk.bf16.mxu1 %vm2819_vm15, %v2520_v53  ;;  %v786_v41 = vadd.f32 %v770_v15, %v728_v24  ;;  %v906_v18 = vsel %vm885_vm14, %v2832_v23, 0.0  ;;  %v907_v40 = vsel %vm886_vm7, %v2832_v23, 0.0  ;;  %vm2880_vm13 = vmpackc.low %vm319_vm10, %vm318_vm4  ;;  %v345_v28 = vld [vmem:[#allocation3 + $0x30] sm:$0xff] }
  0x56   :  { %vm928_vm0 = vcmp.eq.s32.totalorder %v2082_v3, %v2811_v33  ;;  %v948_v45 = vsel %vm927_vm1, %v2841_v37, 0.0  ;;  %vm985_vm9 = vcmp.eq.s32.totalorder %v2079_v2, %v2846_v35  ;;  %vm986_vm12 = vcmp.eq.s32.totalorder %v2082_v3, %v2846_v35 }
  0x57   :  { %v949_v46 = vsel %vm928_vm0, %v2841_v37, 0.0  ;;  %v1890_v48 = vpack.c.bf16 %v786_v41, %v785_v38  ;;  %v964_v49 = vadd.f32 %v948_v45, %v906_v18  ;;  %v1006_v51 = vsel %vm985_vm9, %v2860_v42, 0.0 }
  0x58   :  { %v965_v50 = vadd.f32 %v949_v46, %v907_v40  ;;  %1801 = vmatpush3.bf16.msk.msra.mxu1 %vm2819_vm15, %v2520_v53  ;;  %v1007_v52 = vsel %vm986_vm12, %v2860_v42, 0.0  ;;  %vm1043_vm8 = vcmp.eq.s32.totalorder %v2079_v2, %v2872_v43  ;;  %vm1044_vm3 = vcmp.eq.s32.totalorder %v2082_v3, %v2872_v43  ;;  %v346_v46 = vld [vmem:[#allocation3 + $0x38] sm:$0xff] }
  0x59   :  { %vm320_vm6 = vcmp.eq.s32.totalorder %v2247_v32, %v2435_v22  ;;  %1891 = vmatprep.subr.bf16.mxu0 %v1890_v48  ;;  %1804 = vmatprep.subr.msk.bf16.mxu1 %vm2880_vm13, %v2520_v53  ;;  %v1022_v54 = vadd.f32 %v1006_v51, %v964_v49  ;;  %v1064_v34 = vsel %vm1043_vm8, %v2893_v47, 0.0  ;;  %v1065_v55 = vsel %vm1044_vm3, %v2893_v47, 0.0 }
  0x5a   :  { %v1023_v12 = vadd.f32 %v1007_v52, %v965_v50  ;;  %1893 = vmatpush3.bf16.msra.mxu0 %v1890_v48  ;;  %vm321_vm11 = vcmp.eq.s32.totalorder %v2301_v39, %v2435_v22  ;;  %vm887_vm15 = vcmp.eq.s32.totalorder %v2085_v4, %v2806_v31  ;;  %vm888_vm5 = vcmp.eq.s32.totalorder %v2088_v5, %v2806_v31 }
  0x5b   :  { %vm929_vm2 = vcmp.eq.s32.totalorder %v2085_v4, %v2811_v33  ;;  %v1080_v2 = vadd.f32 %v1064_v34, %v1022_v54  ;;  %vm2922_vm4 = vmpackc.low %vm321_vm11, %vm320_vm6  ;;  %v908_v58 = vsel %vm887_vm15, %v2832_v23, 0.0  ;;  %v909_v14 = vsel %vm888_vm5, %v2832_v23, 0.0 }
  0x5c   :  { %v1081_v3 = vadd.f32 %v1065_v55, %v1023_v12  ;;  %1807 = vmatpush3.bf16.msk.msra.mxu1 %vm2880_vm13, %v2520_v53  ;;  %vm930_vm10 = vcmp.eq.s32.totalorder %v2088_v5, %v2811_v33  ;;  %v950_v61 = vsel %vm929_vm2, %v2841_v37, 0.0  ;;  %vm987_vm14 = vcmp.eq.s32.totalorder %v2085_v4, %v2846_v35 }
  0x5d   :  { %vm988_vm7 = vcmp.eq.s32.totalorder %v2088_v5, %v2846_v35  ;;  %1664 = vmatmul.mubr.f32.vlgmr.msra.gmra.mrb[0].mxu0 %v788_v56  ;;  %1810 = vmatprep.subr.msk.bf16.mxu1 %vm2922_vm4, %v2520_v53  ;;  %v951_v62 = vsel %vm930_vm10, %v2841_v37, 0.0  ;;  %v966_v63 = vadd.f32 %v950_v61, %v908_v58  ;;  %v1008_v0 = vsel %vm987_vm14, %v2860_v42, 0.0 }
  0x5e   :  { %v1894_v22 = vpack.c.bf16 %v1081_v3, %v1080_v2  ;;  %v967_v1 = vadd.f32 %v951_v62, %v909_v14  ;;  %v1009_v59 = vsel %vm988_vm7, %v2860_v42, 0.0  ;;  %vm1045_vm1 = vcmp.eq.s32.totalorder %v2085_v4, %v2872_v43  ;;  %1666 = vmatprep.mubr.f32.mxu0 %v789_v60 }
  0x5f   :  { %vm1046_vm0 = vcmp.eq.s32.totalorder %v2088_v5, %v2872_v43  ;;  %v1024_v27 = vadd.f32 %v1008_v0, %v966_v63  ;;  %v1066_v29 = vsel %vm1045_vm1, %v2893_v47, 0.0  ;;  %vm889_vm13 = vcmp.eq.s32.totalorder %v2091_v6, %v2806_v31 }
  0x60   :  { %1895 = vmatprep.subr.bf16.mxu0 %v1894_v22  ;;  %v1067_v30 = vsel %vm1046_vm0, %v2893_v47, 0.0  ;;  %1813 = vmatpush3.bf16.msk.msra.mxu1 %vm2922_vm4, %v2520_v53  ;;  %v1025_v4 = vadd.f32 %v1009_v59, %v967_v1  ;;  %vm890_vm9 = vcmp.eq.s32.totalorder %v2094_v7, %v2806_v31  ;;  %v910_v5 = vsel %vm889_vm13, %v2832_v23, 0.0 }
  0x61   :  { %1897 = vmatpush3.bf16.msra.mxu0 %v1894_v22  ;;  %vm931_vm12 = vcmp.eq.s32.totalorder %v2091_v6, %v2811_v33  ;;  %v1082_v19 = vadd.f32 %v1066_v29, %v1024_v27  ;;  %v911_v36 = vsel %vm890_vm9, %v2832_v23, 0.0  ;;  %vm932_vm8 = vcmp.eq.s32.totalorder %v2094_v7, %v2811_v33 }
  0x62   :  { %v952_v24 = vsel %vm931_vm12, %v2841_v37, 0.0  ;;  %1667 = vmatmul.mubr.f32.gmra.mrb[2].mxu0 %v790_v13  ;;  %v1083_v53 = vadd.f32 %v1067_v30, %v1025_v4  ;;  %v953_v15 = vsel %vm932_vm8, %v2841_v37, 0.0  ;;  %vm989_vm3 = vcmp.eq.s32.totalorder %v2091_v6, %v2846_v35 }
  0x63   :  { %v968_v38 = vadd.f32 %v952_v24, %v910_v5  ;;  %1701 = vmatprep.mubr.f32.mxu0 %v1096_v16  ;;  %1588 = vmatmul.mubr.f32.vlgmr.msra.gmra.mrb[0].mxu1 %v344_v17  ;;  %v969_v41 = vadd.f32 %v953_v15, %v911_v36  ;;  %vm990_vm6 = vcmp.eq.s32.totalorder %v2094_v7, %v2846_v35  ;;  %v1010_v18 = vsel %vm989_vm3, %v2860_v42, 0.0 }
  0x64   :  { %vm1047_vm11 = vcmp.eq.s32.totalorder %v2091_v6, %v2872_v43  ;;  %v1898_v40 = vpack.c.bf16 %v1083_v53, %v1082_v19  ;;  %v1011_v44 = vsel %vm990_vm6, %v2860_v42, 0.0  ;;  %vm1048_vm15 = vcmp.eq.s32.totalorder %v2094_v7, %v2872_v43  ;;  %1590 = vmatprep.mubr.f32.mxu1 %v345_v28 }
  0x65   :  { %v1026_v45 = vadd.f32 %v1010_v18, %v968_v38  ;;  %v1027_v48 = vadd.f32 %v1011_v44, %v969_v41  ;;  %v1068_v49 = vsel %vm1047_vm11, %v2893_v47, 0.0  ;;  %v1069_v50 = vsel %vm1048_vm15, %v2893_v47, 0.0 }
  0x66   :  { %vm891_vm5 = vcmp.eq.s32.totalorder %v2097_v8, %v2806_v31  ;;  %1899 = vmatprep.subr.bf16.mxu0 %v1898_v40  ;;  %vm892_vm2 = vcmp.eq.s32.totalorder %v2100_v9, %v2806_v31  ;;  %vm933_vm4 = vcmp.eq.s32.totalorder %v2097_v8, %v2811_v33  ;;  %vm934_vm10 = vcmp.eq.s32.totalorder %v2100_v9, %v2811_v33 }
  0x67   :  { %v1084_v51 = vadd.f32 %v1068_v49, %v1026_v45  ;;  %v912_v6 = vsel %vm891_vm5, %v2832_v23, 0.0  ;;  %1901 = vmatpush3.bf16.msra.mxu0 %v1898_v40  ;;  %v1085_v7 = vadd.f32 %v1069_v50, %v1027_v48  ;;  %1591 = vmatmul.mubr.f32.gmra.mrb[2].mxu1 %v346_v46  ;;  %v913_v52 = vsel %vm892_vm2, %v2832_v23, 0.0 }
  0x68   :  { %v954_v54 = vsel %vm933_vm4, %v2841_v37, 0.0  ;;  %v955_v12 = vsel %vm934_vm10, %v2841_v37, 0.0  ;;  %vm991_vm14 = vcmp.eq.s32.totalorder %v2097_v8, %v2846_v35  ;;  %vm992_vm7 = vcmp.eq.s32.totalorder %v2100_v9, %v2846_v35 }
  0x69   :  { %v970_v34 = vadd.f32 %v954_v54, %v912_v6  ;;  %v1902_v55 = vpack.c.bf16 %v1085_v7, %v1084_v51  ;;  %v971_v56 = vadd.f32 %v955_v12, %v913_v52  ;;  %v1012_v2 = vsel %vm991_vm14, %v2860_v42, 0.0 }
  0x6a   :  { %v1013_v3 = vsel %vm992_vm7, %v2860_v42, 0.0  ;;  %vm1049_vm1 = vcmp.eq.s32.totalorder %v2097_v8, %v2872_v43  ;;  %vm1050_vm0 = vcmp.eq.s32.totalorder %v2100_v9, %v2872_v43  ;;  %vm893_vm13 = vcmp.eq.s32.totalorder %v2103_v10, %v2806_v31 }
  0x6b   :  { %v1028_v57 = vadd.f32 %v1012_v2, %v970_v34  ;;  %1903 = vmatprep.subr.bf16.mxu0 %v1902_v55  ;;  %v1029_v58 = vadd.f32 %v1013_v3, %v971_v56  ;;  %v1070_v14 = vsel %vm1049_vm1, %v2893_v47, 0.0  ;;  %v1071_v60 = vsel %vm1050_vm0, %v2893_v47, 0.0 }
  0x6c   :  { %vm894_vm9 = vcmp.eq.s32.totalorder %v2106_v11, %v2806_v31  ;;  %1905 = vmatpush3.bf16.msra.mxu0 %v1902_v55  ;;  %v914_v22 = vsel %vm893_vm13, %v2832_v23, 0.0  ;;  %vm935_vm12 = vcmp.eq.s32.totalorder %v2103_v10, %v2811_v33  ;;  %vm936_vm8 = vcmp.eq.s32.totalorder %v2106_v11, %v2811_v33 }
  0x6d   :  { %v1086_v61 = vadd.f32 %v1070_v14, %v1028_v57  ;;  %v915_v8 = vsel %vm894_vm9, %v2832_v23, 0.0  ;;  %v1087_v9 = vadd.f32 %v1071_v60, %v1029_v58  ;;  %v956_v62 = vsel %vm935_vm12, %v2841_v37, 0.0 }
  0x6e   :  { %vm993_vm3 = vcmp.eq.s32.totalorder %v2103_v10, %v2846_v35  ;;  %v957_v63 = vsel %vm936_vm8, %v2841_v37, 0.0  ;;  %v972_v0 = vadd.f32 %v956_v62, %v914_v22  ;;  %vm994_vm6 = vcmp.eq.s32.totalorder %v2106_v11, %v2846_v35  ;;  %v1098_v62 = vld [vmem:[#allocation3 + $0x90] sm:$0xff] }
  0x6f   :  { %v1014_v1 = vsel %vm993_vm3, %v2860_v42, 0.0  ;;  %v1906_v59 = vpack.c.bf16 %v1087_v9, %v1086_v61  ;;  %v973_v13 = vadd.f32 %v957_v63, %v915_v8  ;;  %v1015_v27 = vsel %vm994_vm6, %v2860_v42, 0.0 }
  0x70   :  { %vm1051_vm11 = vcmp.eq.s32.totalorder %v2103_v10, %v2872_v43  ;;  %v1030_v29 = vadd.f32 %v1014_v1, %v972_v0  ;;  %vm1052_vm15 = vcmp.eq.s32.totalorder %v2106_v11, %v2872_v43  ;;  %vm895_vm5 = vcmp.eq.s32.totalorder %v2160_v20, %v2806_v31 }
  0x71   :  { %v1072_v30 = vsel %vm1051_vm11, %v2893_v47, 0.0  ;;  %1907 = vmatprep.subr.bf16.mxu0 %v1906_v59  ;;  %v1031_v16 = vadd.f32 %v1015_v27, %v973_v13  ;;  %v1073_v4 = vsel %vm1052_vm15, %v2893_v47, 0.0  ;;  %vm896_vm2 = vcmp.eq.s32.totalorder %v2163_v21, %v2806_v31 }
  0x72   :  { %v916_v17 = vsel %vm895_vm5, %v2832_v23, 0.0  ;;  %1909 = vmatpush3.bf16.msra.mxu0 %v1906_v59  ;;  %v1088_v10 = vadd.f32 %v1072_v30, %v1030_v29  ;;  %v917_v5 = vsel %vm896_vm2, %v2832_v23, 0.0  ;;  %vm937_vm4 = vcmp.eq.s32.totalorder %v2160_v20, %v2811_v33 }
  0x73   :  { %vm938_vm10 = vcmp.eq.s32.totalorder %v2163_v21, %v2811_v33  ;;  %v1089_v11 = vadd.f32 %v1073_v4, %v1031_v16  ;;  %v958_v19 = vsel %vm937_vm4, %v2841_v37, 0.0  ;;  %vm995_vm14 = vcmp.eq.s32.totalorder %v2160_v20, %v2846_v35 }
  0x74   :  { %v959_v36 = vsel %vm938_vm10, %v2841_v37, 0.0  ;;  %v974_v24 = vadd.f32 %v958_v19, %v916_v17  ;;  %vm996_vm7 = vcmp.eq.s32.totalorder %v2163_v21, %v2846_v35  ;;  %v1016_v53 = vsel %vm995_vm14, %v2860_v42, 0.0 }
  0x75   :  { %v975_v28 = vadd.f32 %v959_v36, %v917_v5  ;;  %v1910_v15 = vpack.c.bf16 %v1089_v11, %v1088_v10  ;;  %v1017_v38 = vsel %vm996_vm7, %v2860_v42, 0.0  ;;  %vm1053_vm1 = vcmp.eq.s32.totalorder %v2160_v20, %v2872_v43 }
  0x76   :  { %vm1054_vm0 = vcmp.eq.s32.totalorder %v2163_v21, %v2872_v43  ;;  %v1032_v41 = vadd.f32 %v1016_v53, %v974_v24  ;;  %v1074_v40 = vsel %vm1053_vm1, %v2893_v47, 0.0  ;;  %vm897_vm13 = vcmp.eq.s32.totalorder %v2185_v25, %v2806_v31 }
  0x77   :  { %v1033_v18 = vadd.f32 %v1017_v38, %v975_v28  ;;  %v1075_v44 = vsel %vm1054_vm0, %v2893_v47, 0.0  ;;  %1911 = vmatprep.subr.bf16.mxu0 %v1910_v15  ;;  %vm898_vm9 = vcmp.eq.s32.totalorder %v2188_v26, %v2806_v31  ;;  %vm939_vm12 = vcmp.eq.s32.totalorder %v2185_v25, %v2811_v33 }
  0x78   :  { %vm940_vm8 = vcmp.eq.s32.totalorder %v2188_v26, %v2811_v33  ;;  %1913 = vmatpush3.bf16.msra.mxu0 %v1910_v15  ;;  %v1090_v20 = vadd.f32 %v1074_v40, %v1032_v41  ;;  %v918_v45 = vsel %vm897_vm13, %v2832_v23, 0.0  ;;  %v919_v46 = vsel %vm898_vm9, %v2832_v23, 0.0 }
  0x79   :  { %v1091_v21 = vadd.f32 %v1075_v44, %v1033_v18  ;;  %v960_v48 = vsel %vm939_vm12, %v2841_v37, 0.0  ;;  %v961_v49 = vsel %vm940_vm8, %v2841_v37, 0.0  ;;  %vm997_vm3 = vcmp.eq.s32.totalorder %v2185_v25, %v2846_v35 }
  0x7a   :  { %vm998_vm6 = vcmp.eq.s32.totalorder %v2188_v26, %v2846_v35  ;;  %v976_v51 = vadd.f32 %v960_v48, %v918_v45  ;;  %v977_v6 = vadd.f32 %v961_v49, %v919_v46  ;;  %v1018_v7 = vsel %vm997_vm3, %v2860_v42, 0.0 }
  0x7b   :  { %v1914_v50 = vpack.c.bf16 %v1091_v21, %v1090_v20  ;;  %v1019_v52 = vsel %vm998_vm6, %v2860_v42, 0.0  ;;  %vm1055_vm11 = vcmp.eq.s32.totalorder %v2185_v25, %v2872_v43  ;;  %vm1056_vm15 = vcmp.eq.s32.totalorder %v2188_v26, %v2872_v43  ;;  %v1221_v20 = vld [vmem:[%s3121_s6] sm:$0x1]  ;;  %s1988_s6 = scalar_lea.vmem %s1315_s10, 16 }
  0x7c   :  { %vm899_vm5 = vcmp.eq.s32.totalorder %v2247_v32, %v2806_v31  ;;  %v1034_v54 = vadd.f32 %v1018_v7, %v976_v51  ;;  %v1035_v12 = vadd.f32 %v1019_v52, %v977_v6  ;;  %v1076_v34 = vsel %vm1055_vm11, %v2893_v47, 0.0  ;;  %p1989_p8 = scmp.ne.s32.totalorder %s1315_s10, %s1988_s6 }
  0x7d   :  { %1915 = vmatprep.subr.bf16.mxu0 %v1914_v50  ;;  %v1077_v55 = vsel %vm1056_vm15, %v2893_v47, 0.0  ;;  %vm900_vm2 = vcmp.eq.s32.totalorder %v2301_v39, %v2806_v31  ;;  %v920_v56 = vsel %vm899_vm5, %v2832_v23, 0.0  ;;  %vm941_vm4 = vcmp.eq.s32.totalorder %v2247_v32, %v2811_v33 }
  0x7e   :  { %1917 = vmatpush3.bf16.msra.mxu0 %v1914_v50  ;;  %vm942_vm10 = vcmp.eq.s32.totalorder %v2301_v39, %v2811_v33  ;;  %v1092_v25 = vadd.f32 %v1076_v34, %v1034_v54  ;;  %v1093_v26 = vadd.f32 %v1077_v55, %v1035_v12  ;;  %v921_v2 = vsel %vm900_vm2, %v2832_v23, 0.0 }
  0x7f   :  { %v962_v3 = vsel %vm941_vm4, %v2841_v37, 0.0  ;;  %v963_v57 = vsel %vm942_vm10, %v2841_v37, 0.0  ;;  %vm999_vm14 = vcmp.eq.s32.totalorder %v2247_v32, %v2846_v35  ;;  %vm1000_vm7 = vcmp.eq.s32.totalorder %v2301_v39, %v2846_v35 }
  0x80   :  { %v978_v58 = vadd.f32 %v962_v3, %v920_v56  ;;  %v1918_v31 = vpack.c.bf16 %v1093_v26, %v1092_v25  ;;  %v979_v14 = vadd.f32 %v963_v57, %v921_v2  ;;  %v1020_v60 = vsel %vm999_vm14, %v2860_v42, 0.0 }
  0x81   :  { %v1021_v33 = vsel %vm1000_vm7, %v2860_v42, 0.0  ;;  %vm1057_vm1 = vcmp.eq.s32.totalorder %v2247_v32, %v2872_v43  ;;  %vm1058_vm0 = vcmp.eq.s32.totalorder %v2301_v39, %v2872_v43  ;;  %v1097_v42 = vld [vmem:[#allocation3 + $0x88] sm:$0xff]  ;;  %v1099_v32 = vld [vmem:[#allocation3 + $0x98] sm:$0xff]  ;;  %v2018_v63 = vmov 0.0|0.0  }
  0x82   :  { %v1036_v61 = vadd.f32 %v1020_v60, %v978_v58  ;;  %1919 = vmatprep.subr.bf16.mxu0 %v1918_v31  ;;  %v1037_v23 = vadd.f32 %v1021_v33, %v979_v14  ;;  %v1078_v37 = vsel %vm1057_vm1, %v2893_v47, 0.0  ;;  %v1079_v22 = vsel %vm1058_vm0, %v2893_v47, 0.0  ;;  %1926 = vmatprep.subr.bf16.mxu1 %v2018_v63 }
  0x83   :  { %1921 = vmatpush3.bf16.msra.mxu0 %v1918_v31  ;;  %vm2019_vm13 = vmmov 0   ;;  %v2020_v39 = vmov 0.0   ;;  %vm1223_vm9 = vcmask 261120   ;;  %v1222_v21 = vstv %s3122_s7  ;;  %s1992_s7 = scalar_lea.vmem %s1315_s10, 32 }
  0x84   :  { %v1094_v35 = vadd.f32 %v1078_v37, %v1036_v61  ;;  %v1095_v8 = vadd.f32 %v1079_v22, %v1037_v23  ;;  %1715 = vmatprep.mubr.msk.f32.mxu1 %vm2019_vm13, %v2020_v39  ;;  %p1994_p10 = scmp.lt.s32.totalorder %s1992_s7, %s1988_s6 }
  0x86   :  { %v1922_v9 = vpack.c.bf16 %v1095_v8, %v1094_v35  ;;  %p1995_p11 = por %p1994_p10, %p1993_p9 }
  0x88   :  { %1923 = vmatprep.subr.bf16.mxu0 %v1922_v9  ;;  %p1996_p12 = pnand %p1995_p11, %p1989_p8 }
  0x89   :  { %1925 = vmatpush3.bf16.msra.mxu0 %v1922_v9 }
  0x8c   :  { %1702 = vmatmul.mubr.f32.vlgmr.msra.gmra.mrb[0].mxu0 %v1097_v42 }
  0x8d   :  { %1704 = vmatprep.mubr.f32.mxu0 %v1098_v62 }
  0x90   :  { %1705 = vmatmul.mubr.f32.gmra.mrb[2].mxu0 %v1099_v32 }
  0x94   :  { %v1206_v13 = vpop.permute.xlu1 %1205 }
  0x98   :  { %v1211_v28 = vpop.permute.xlu1 %1210 }
  0x9e   :  { %v1196_v59 = vpop.permute.xlu0 %1195 }
  0xa5   :  { %v1201_v16 = vpop.permute.xlu0 %1200 }
 0x136   :  { %v1589_v43 = vpop.f32.mrb[0].mxu1 }
 0x137   :  { %v413_v0 = vpop.f32.mrb[1].mxu1 }
 0x13a   :  { %v1592_v47 = vpop.f32.mrb[2].mxu1 }
 0x13b   :  { %v423_v1 = vpop.f32.mrb[3].mxu1 }
 0x15f   :  { %v1703_v27 = vpop.f32.mrb[0].mxu0 }
 0x160   :  { %v1932_v29 = vadd.f32 %v1703_v27, %v1589_v43  ;;  %v1166_v30 = vpop.f32.mrb[1].mxu0 }
 0x161   :  { %v1933_v4 = vadd.f32 %v1166_v30, %v413_v0 }
 0x162   :  { %v1214_v17 = vadd.f32 %v1932_v29, %v1201_v16 }
 0x163   :  { %v1213_v10 = vadd.f32 %v1933_v4, %v1196_v59  ;;  %v1706_v5 = vpop.f32.mrb[2].mxu0 }
 0x164   :  { %v1218_v11 = vmax.f32 %v1214_v17, 0.0  ;;  %v1934_v19 = vadd.f32 %v1706_v5, %v1592_v47  ;;  %v1176_v36 = vpop.f32.mrb[3].mxu0 }
 0x165   :  { %v1217_v24 = vmax.f32 %v1213_v10, 0.0  ;;  %v1935_v53 = vadd.f32 %v1176_v36, %v423_v1 }
 0x166   :  { %v1216_v15 = vadd.f32 %v1934_v19, %v1211_v28 }
 0x167   :  { %v1927_v38 = vpack.c.bf16 %v1218_v11, %v1217_v24  ;;  %v1215_v41 = vadd.f32 %v1935_v53, %v1206_v13 }
 0x168   :  { %v1220_v18 = vmax.f32 %v1216_v15, 0.0 }
 0x169   :  { %v1219_v40 = vmax.f32 %v1215_v41, 0.0  ;;  %1928 = vmatpush3.bf16.msra.mxu1 %v1927_v38 }
 0x16a   :  { %1929 = vmatprep.subr.bf16.mxu1 %v2018_v63 }
 0x16b   :  { %v1930_v44 = vpack.c.bf16 %v1220_v18, %v1219_v40 }
 0x16d   :  { %1931 = vmatpush3.bf16.msra.mxu1 %v1930_v44 }
 0x170   :  { %1716 = vmatmul.mubr.msk.f32.vlgmr.msra.gmra.mrb[4].mxu1 %vm1223_vm9, %v1221_v20 }
 0x243   :  { %v1293_v45 = vpop.f32.mrb[4].mxu1 }
 0x244   :  { %v1294_v46 = vadd.f32 %v1293_v45, %v1222_v21  ;;  %v1717_v48 = vpop.f32.mrb[5].mxu1 }
 0x246   :  { %vm1297_vm12 = vcmp.ge.f32.partialorder %v1294_v46, 0.0  ;;  %v1298_v49 = vsub.f32 0.0, %v1294_v46 }
 0x248   :  { %v1299_v50 = vsel %vm1297_vm12, %v1298_v49, %v1294_v46 }
 0x249   :  { %v1300_v51 = vmul.f32 1.442695, %v1299_v50 }
 0x24b   :  { %1962 = vpow2.f32 %v1300_v51 }
 0x255   :  { %v1963_v6 = vpop.eup %1962 }
 0x256   :  { %v1302_v7 = vadd.f32 1.0, %v1963_v6 }
 0x258   :  { %1964 = vrcp.f32 %v1302_v7 }
 0x262   :  { %v1965_v52 = vpop.eup %1964 }
 0x263   :  { %v1305_v54 = vmul.f32 %v1965_v52, %v1963_v6 }
 0x265   :  { %v1306_v12 = vsel %vm1297_vm12, %v1965_v52, %v1305_v54 }
 0x266   :  { %1307 = vst [vmem:[#allocation6] sm:$0x1] %v1306_v12 }
 0x267   :  { %1999 = shalt.err (!%p1996_p12)
}
 0x268   :  { %s2000_s13 = scalar_lea.hbm %s3123_s8, 16 }
 0x269   :  { %p2001_p13 = scmp.ne.s32.totalorder %s3123_s8, %s2000_s13  ;;  %p2004_p0 = scmp.lt.u32.totalorder %s2000_s13, %s3123_s8 }
 0x26b   :  { %p2006_p1 = pnand %p2004_p0, %p2001_p13 }
 0x26d   :  { %2009 = shalt.err (!%p2006_p1)
}
 0x26e   :  { %1317 = dma.vmem_to_hbm [thread:$0]  %s1315_s10, 16, %s3123_s8, [#allocation5]  }
 0x26f   :  { %2012 = dma.done.wait [#allocation5], 16  }
 0x270   :  { %2013 = vsyncadd [#allocation5], 4294967280 }
 0x271   :  { %1321 = vsyncpa [#allocation4], 1 }
 0x272   :  { %1322 = vsyncpa [#allocation5], 1 }

</bundles_post_ra>
